<compile_context>
chip_gen: v7x
topology: tpu7x:2x2x1
jax: 0.10.0
libtpu: 0.0.40
codegen_flags: <defaults>
</compile_context>

<pallas_src>
import jax
import jax.numpy as jnp
from jax.experimental import pallas as pl
from jax.experimental.pallas import tpu as pltpu

EPS = 1e-5
F_PAD = 128    # input feature channels padded to a full lane width
H_PAD = 128    # hidden_channels padded to a full lane width
MLP_PAD = 128  # lin1 output padded
OUT_PAD = 128  # lin2 output padded (real output is column 0)
G_PAD = 8      # graphs-per-batch padded to a full sublane


def gnn_kernel(x_ref, a_ref, mask_ref,
               w1_ref, b1_ref, w2_ref, b2_ref, w3_ref, b3_ref,
               wlin1_ref, blin1_ref, wlin2_ref, blin2_ref,
               out_ref):
    A = a_ref[...]                   # [N, N] bf16 weighted adjacency (dst, src)
    h = x_ref[...]                   # [N, F_PAD] f32 node features

    def graph_conv_bn_relu(h, w_ref, b_ref):
        # GraphConv + folded BatchNorm, fused into a single weight matmul:
        #   out = [A @ h , h] @ [Wrel*s ; Wroot*s] + (brel*s + t)
        agg = jnp.dot(A, h.astype(jnp.bfloat16),
                      preferred_element_type=jnp.float32)             # [N, C]
        z = jnp.concatenate([agg, h], axis=1).astype(jnp.bfloat16)    # [N, 2C]
        out = jnp.dot(z, w_ref[...], preferred_element_type=jnp.float32)
        out = out + b_ref[...]
        return jnp.maximum(out, 0.0)                                   # ReLU

    h = graph_conv_bn_relu(h, w1_ref, b1_ref)    # [N, H_PAD]
    h = graph_conv_bn_relu(h, w2_ref, b2_ref)
    h = graph_conv_bn_relu(h, w3_ref, b3_ref)

    # global_max_pool: vectorized masked max over member nodes.
    mask = mask_ref[...]                          # [G_PAD, N]
    neg = jnp.float32(jnp.finfo(jnp.float32).min)
    masked = jnp.where(mask[:, :, None] > 0.0, h[None, :, :], neg)
    pooled = jnp.max(masked, axis=1)              # [G_PAD, H_PAD]
    has_nodes = jnp.max(mask, axis=1, keepdims=True) > 0.0
    pooled = jnp.where(has_nodes, pooled, 0.0)    # guard empty / padded graphs

    # dropout: identity in eval mode.

    # lin1 -> relu -> lin2 -> sigmoid (lane-padded; real output = column 0).
    z = jnp.dot(pooled.astype(jnp.bfloat16), wlin1_ref[...],
                preferred_element_type=jnp.float32) + blin1_ref[...]
    z = jnp.maximum(z, 0.0)
    y = jnp.dot(z.astype(jnp.bfloat16), wlin2_ref[...],
                preferred_element_type=jnp.float32) + blin2_ref[...]
    out_ref[...] = jax.nn.sigmoid(y)


def gnn_forward(x, A, pool_mask, fused, *, num_graphs):
    """x: [B, N, F_PAD] f32, A: [B, N, N] bf16, pool_mask: [B, G_PAD, N] f32."""
    B, N, Fp = x.shape
    Gp = pool_mask.shape[1]

    weight_order = ["w1", "b1", "w2", "b2", "w3", "b3",
                    "wlin1", "blin1", "wlin2", "blin2"]
    weights = [fused[k] for k in weight_order]

    in_specs = [
        pl.BlockSpec((None, N, Fp), lambda b: (b, 0, 0)),   # x   (per-batch)
        pl.BlockSpec((None, N, N), lambda b: (b, 0, 0)),    # A   (per-batch)
        pl.BlockSpec((None, Gp, N), lambda b: (b, 0, 0)),   # pool mask
    ] + [pl.BlockSpec(w.shape, lambda b: (0, 0)) for w in weights]  # shared

    out = pl.pallas_call(
        gnn_kernel,
        grid=(B,),
        in_specs=in_specs,
        out_specs=pl.BlockSpec((None, Gp, OUT_PAD), lambda b: (b, 0, 0)),
        out_shape=jax.ShapeDtypeStruct((B, Gp, OUT_PAD), jnp.float32),
        compiler_params=pltpu.CompilerParams(
            dimension_semantics=("parallel",)),
    )(x, A, pool_mask, *weights)
    return out[:, :num_graphs, :1]               # [B, G, 1]


def make_raw_params(key, features_channels, hidden_channels):
    """Deterministic synthetic parameters mirroring model1.__init__ shapes."""
    F, H = features_channels, hidden_channels
    keys = jax.random.split(key, 32)
    k = iter(keys)

    def rnd(shape):
        return 0.1 * jax.random.normal(next(k), shape, jnp.float32)

    p = {}
    for i, (cin, cout) in enumerate([(F, H), (H, H), (H, H)], start=1):
        p[f"wrel{i}"] = rnd((cin, cout))    # lin_rel weight (with bias)
        p[f"wroot{i}"] = rnd((cin, cout))   # lin_root weight (no bias)
        p[f"brel{i}"] = rnd((1, cout))
        p[f"gamma{i}"] = 1.0 + 0.1 * jax.random.normal(next(k), (1, cout), jnp.float32)
        p[f"beta{i}"] = rnd((1, cout))
        p[f"mean{i}"] = rnd((1, cout))
        p[f"var{i}"] = 0.5 + jnp.abs(jax.random.normal(next(k), (1, cout), jnp.float32))
    p["wlin1"] = rnd((H, 16))
    p["blin1"] = rnd((1, 16))
    p["wlin2"] = rnd((16, 1))
    p["blin2"] = rnd((1, 1))
    return p


def pad2d(w, rows, cols):
    return jnp.zeros((rows, cols), w.dtype).at[: w.shape[0], : w.shape[1]].set(w)


def fold_and_pad_params(raw, features_channels, hidden_channels):
    """Fold eval-mode BN into GraphConv, stack Wrel/Wroot, zero-pad to lanes."""
    fused = {}
    for i in range(1, 4):
        s = raw[f"gamma{i}"] * jax.lax.rsqrt(raw[f"var{i}"] + EPS)
        t = raw[f"beta{i}"] - raw[f"mean{i}"] * s
        wrel = raw[f"wrel{i}"] * s
        wroot = raw[f"wroot{i}"] * s
        bias = raw[f"brel{i}"] * s + t
        w = jnp.concatenate(
            [pad2d(wrel, H_PAD, H_PAD), pad2d(wroot, H_PAD, H_PAD)], axis=0)
        fused[f"w{i}"] = w.astype(jnp.bfloat16)        # [2*H_PAD, H_PAD]
        fused[f"b{i}"] = pad2d(bias, 1, H_PAD)
    fused["wlin1"] = pad2d(raw["wlin1"], H_PAD, MLP_PAD).astype(jnp.bfloat16)
    fused["blin1"] = pad2d(raw["blin1"], 1, MLP_PAD)
    fused["wlin2"] = pad2d(raw["wlin2"], MLP_PAD, OUT_PAD).astype(jnp.bfloat16)
    fused["blin2"] = pad2d(raw["blin2"], 1, OUT_PAD)
    return fused


def reference_forward(x, A, pool_mask, raw, num_graphs):
    """Pure-JAX f32 reference of the original module (eval mode)."""
    h = x
    for i in range(1, 4):
        agg = A @ h
        out = agg @ raw[f"wrel{i}"] + raw[f"brel{i}"] + h @ raw[f"wroot{i}"]
        out = ((out - raw[f"mean{i}"])
               * raw[f"gamma{i}"] * jax.lax.rsqrt(raw[f"var{i}"] + EPS)
               + raw[f"beta{i}"])
        h = jnp.maximum(out, 0.0)
    m = pool_mask[:num_graphs]
    masked = jnp.where(m[:, :, None] > 0, h[None, :, :], -jnp.inf)
    pooled = jnp.max(masked, axis=1)
    z = jnp.maximum(pooled @ raw["wlin1"] + raw["blin1"], 0.0)
    y = z @ raw["wlin2"] + raw["blin2"]
    return jax.nn.sigmoid(y)


if __name__ == "__main__":
    B = 4      # independent graph batches (grid axis)
    N = 16     # nodes per batch
    F = 8      # features_channels
    H = 32     # hidden_channels
    G = 2      # graphs per batch
    E = 40     # directed edges per batch

    key = jax.random.PRNGKey(0)
    kx, ks, kd, kw, kp = jax.random.split(key, 5)

    x = jax.random.normal(kx, (B, N, F), jnp.float32)
    src = jax.random.randint(ks, (B, E), 0, N)
    dst = jax.random.randint(kd, (B, E), 0, N)
    edge_attr = jnp.abs(jax.random.normal(kw, (B, E), jnp.float32)) + 0.1

    # Glue: densify edge lists into weighted adjacencies (PyG flow src->dst,
    # aggr='add', scalar edge weight), and zero-pad features to 128 lanes.
    def densify(s, d, w):
        return jnp.zeros((N, N), jnp.float32).at[d, s].add(w)
    A_f32 = jax.vmap(densify)(src, dst, edge_attr)            # [B, N, N]
    A_bf16 = A_f32.astype(jnp.bfloat16)
    x_pad = jnp.zeros((B, N, F_PAD), jnp.float32).at[..., :F].set(x)

    # Glue: per-graph membership mask, padded to G_PAD rows.
    batch_vec = jnp.repeat(jnp.arange(G, dtype=jnp.int32), N // G)
    mask = (batch_vec[None, :] == jnp.arange(G)[:, None]).astype(jnp.float32)
    mask_pad = jnp.zeros((G_PAD, N), jnp.float32).at[:G].set(mask)
    pool_mask = jnp.broadcast_to(mask_pad, (B, G_PAD, N))

    raw = make_raw_params(kp, F, H)
    fused = fold_and_pad_params(raw, F, H)

    out = gnn_forward(x_pad, A_bf16, pool_mask, fused, num_graphs=G)
    out = jax.block_until_ready(out)
    assert out.shape == (B, G, 1)
    assert bool(jnp.all(jnp.isfinite(out)))
    assert bool(jnp.all((out >= 0.0) & (out <= 1.0)))

    # Cross-check against the pure-JAX f32 reference (loose tol: bf16 matmuls).
    ref = jax.vmap(lambda xb, Ab, mb: reference_forward(xb, Ab, mb, raw, G))(
        x, A_f32, pool_mask)
    max_err = float(jnp.max(jnp.abs(out - ref)))
    assert max_err < 5e-2, f"max |kernel - reference| = {max_err}"
    print("KERNEL_OK")
</pallas_src>

<mosaic_0001>
module attributes {stable_mosaic.version = 11 : i64} {
  func.func @gnn_kernel(%arg0: i32, %arg1: memref<1x16x128xf32, #tpu.memory_space<vmem>>, %arg2: memref<1x16x16xbf16, #tpu.memory_space<vmem>>, %arg3: memref<1x8x16xf32, #tpu.memory_space<vmem>>, %arg4: memref<256x128xbf16, #tpu.memory_space<vmem>>, %arg5: memref<1x128xf32, #tpu.memory_space<vmem>>, %arg6: memref<256x128xbf16, #tpu.memory_space<vmem>>, %arg7: memref<1x128xf32, #tpu.memory_space<vmem>>, %arg8: memref<256x128xbf16, #tpu.memory_space<vmem>>, %arg9: memref<1x128xf32, #tpu.memory_space<vmem>>, %arg10: memref<128x128xbf16, #tpu.memory_space<vmem>>, %arg11: memref<1x128xf32, #tpu.memory_space<vmem>>, %arg12: memref<128x128xbf16, #tpu.memory_space<vmem>>, %arg13: memref<1x128xf32, #tpu.memory_space<vmem>>, %arg14: memref<1x8x128xf32, #tpu.memory_space<vmem>>) attributes {dimension_semantics = [#tpu.dimension_semantics<parallel>], iteration_bounds = array<i64: 4>, scalar_prefetch = 0 : i64, scratch_operands = 0 : i64, tpu.core_type = #tpu.core_type<tc>, window_params = [{transform_indices = @transform_0, window_bounds = array<i64: 1, 16, 128>}, {transform_indices = @transform_1, window_bounds = array<i64: 1, 16, 16>}, {transform_indices = @transform_2, window_bounds = array<i64: 1, 8, 16>}, {pipeline_mode = #tpu.pipeline_mode<synchronous>, transform_indices = @transform_3, window_bounds = array<i64: 256, 128>}, {pipeline_mode = #tpu.pipeline_mode<synchronous>, transform_indices = @transform_4, window_bounds = array<i64: 1, 128>}, {pipeline_mode = #tpu.pipeline_mode<synchronous>, transform_indices = @transform_5, window_bounds = array<i64: 256, 128>}, {pipeline_mode = #tpu.pipeline_mode<synchronous>, transform_indices = @transform_6, window_bounds = array<i64: 1, 128>}, {pipeline_mode = #tpu.pipeline_mode<synchronous>, transform_indices = @transform_7, window_bounds = array<i64: 256, 128>}, {pipeline_mode = #tpu.pipeline_mode<synchronous>, transform_indices = @transform_8, window_bounds = array<i64: 1, 128>}, {pipeline_mode = #tpu.pipeline_mode<synchronous>, transform_indices = @transform_9, window_bounds = array<i64: 128, 128>}, {pipeline_mode = #tpu.pipeline_mode<synchronous>, transform_indices = @transform_10, window_bounds = array<i64: 1, 128>}, {pipeline_mode = #tpu.pipeline_mode<synchronous>, transform_indices = @transform_11, window_bounds = array<i64: 128, 128>}, {pipeline_mode = #tpu.pipeline_mode<synchronous>, transform_indices = @transform_12, window_bounds = array<i64: 1, 128>}, {transform_indices = @transform_13, window_bounds = array<i64: 1, 8, 128>}]} {
    %c0 = arith.constant 0 : index
    %c0_0 = arith.constant 0 : index
    %c0_1 = arith.constant 0 : index
    %0 = vector.load %arg2[%c0, %c0_0, %c0_1] : memref<1x16x16xbf16, #tpu.memory_space<vmem>>, vector<1x16x16xbf16>
    %1 = vector.shape_cast %0 : vector<1x16x16xbf16> to vector<16x16xbf16>
    %c0_2 = arith.constant 0 : index
    %c0_3 = arith.constant 0 : index
    %c0_4 = arith.constant 0 : index
    %2 = vector.load %arg1[%c0_2, %c0_3, %c0_4] : memref<1x16x128xf32, #tpu.memory_space<vmem>>, vector<1x16x128xf32>
    %3 = vector.shape_cast %2 : vector<1x16x128xf32> to vector<16x128xf32>
    %4 = arith.truncf %3 : vector<16x128xf32> to vector<16x128xbf16>
    %cst = arith.constant dense<0.000000e+00> : vector<16x128xf32>
    %5 = tpu.matmul %1, %4, %cst {dimension_numbers = #tpu.dot_dimension_numbers<[1], [0], [0], [1], [0, 0, 1, 1], [], []>} : vector<16x16xbf16>, vector<16x128xbf16>, vector<16x128xf32> -> vector<16x128xf32>
    %6 = tpu.concatenate %5, %3 in 1 : vector<16x128xf32>, vector<16x128xf32> -> vector<16x256xf32>
    %7 = arith.truncf %6 : vector<16x256xf32> to vector<16x256xbf16>
    %c0_5 = arith.constant 0 : index
    %c0_6 = arith.constant 0 : index
    %8 = vector.load %arg4[%c0_5, %c0_6] : memref<256x128xbf16, #tpu.memory_space<vmem>>, vector<256x128xbf16>
    %cst_7 = arith.constant dense<0.000000e+00> : vector<16x128xf32>
    %9 = tpu.matmul %7, %8, %cst_7 {dimension_numbers = #tpu.dot_dimension_numbers<[1], [0], [0], [1], [0, 0, 1, 1], [], []>} : vector<16x256xbf16>, vector<256x128xbf16>, vector<16x128xf32> -> vector<16x128xf32>
    %c0_8 = arith.constant 0 : index
    %c0_9 = arith.constant 0 : index
    %10 = vector.load %arg5[%c0_8, %c0_9] : memref<1x128xf32, #tpu.memory_space<vmem>>, vector<1x128xf32>
    %11 = vector.broadcast %10 : vector<1x128xf32> to vector<16x128xf32>
    %12 = arith.addf %9, %11 : vector<16x128xf32>
    %cst_10 = arith.constant 0.000000e+00 : f32
    %13 = vector.broadcast %cst_10 : f32 to vector<16x128xf32>
    %14 = arith.maximumf %12, %13 : vector<16x128xf32>
    %15 = arith.truncf %14 : vector<16x128xf32> to vector<16x128xbf16>
    %cst_11 = arith.constant dense<0.000000e+00> : vector<16x128xf32>
    %16 = tpu.matmul %1, %15, %cst_11 {dimension_numbers = #tpu.dot_dimension_numbers<[1], [0], [0], [1], [0, 0, 1, 1], [], []>} : vector<16x16xbf16>, vector<16x128xbf16>, vector<16x128xf32> -> vector<16x128xf32>
    %17 = tpu.concatenate %16, %14 in 1 : vector<16x128xf32>, vector<16x128xf32> -> vector<16x256xf32>
    %18 = arith.truncf %17 : vector<16x256xf32> to vector<16x256xbf16>
    %c0_12 = arith.constant 0 : index
    %c0_13 = arith.constant 0 : index
    %19 = vector.load %arg6[%c0_12, %c0_13] : memref<256x128xbf16, #tpu.memory_space<vmem>>, vector<256x128xbf16>
    %cst_14 = arith.constant dense<0.000000e+00> : vector<16x128xf32>
    %20 = tpu.matmul %18, %19, %cst_14 {dimension_numbers = #tpu.dot_dimension_numbers<[1], [0], [0], [1], [0, 0, 1, 1], [], []>} : vector<16x256xbf16>, vector<256x128xbf16>, vector<16x128xf32> -> vector<16x128xf32>
    %c0_15 = arith.constant 0 : index
    %c0_16 = arith.constant 0 : index
    %21 = vector.load %arg7[%c0_15, %c0_16] : memref<1x128xf32, #tpu.memory_space<vmem>>, vector<1x128xf32>
    %22 = vector.broadcast %21 : vector<1x128xf32> to vector<16x128xf32>
    %23 = arith.addf %20, %22 : vector<16x128xf32>
    %cst_17 = arith.constant 0.000000e+00 : f32
    %24 = vector.broadcast %cst_17 : f32 to vector<16x128xf32>
    %25 = arith.maximumf %23, %24 : vector<16x128xf32>
    %26 = arith.truncf %25 : vector<16x128xf32> to vector<16x128xbf16>
    %cst_18 = arith.constant dense<0.000000e+00> : vector<16x128xf32>
    %27 = tpu.matmul %1, %26, %cst_18 {dimension_numbers = #tpu.dot_dimension_numbers<[1], [0], [0], [1], [0, 0, 1, 1], [], []>} : vector<16x16xbf16>, vector<16x128xbf16>, vector<16x128xf32> -> vector<16x128xf32>
    %28 = tpu.concatenate %27, %25 in 1 : vector<16x128xf32>, vector<16x128xf32> -> vector<16x256xf32>
    %29 = arith.truncf %28 : vector<16x256xf32> to vector<16x256xbf16>
    %c0_19 = arith.constant 0 : index
    %c0_20 = arith.constant 0 : index
    %30 = vector.load %arg8[%c0_19, %c0_20] : memref<256x128xbf16, #tpu.memory_space<vmem>>, vector<256x128xbf16>
    %cst_21 = arith.constant dense<0.000000e+00> : vector<16x128xf32>
    %31 = tpu.matmul %29, %30, %cst_21 {dimension_numbers = #tpu.dot_dimension_numbers<[1], [0], [0], [1], [0, 0, 1, 1], [], []>} : vector<16x256xbf16>, vector<256x128xbf16>, vector<16x128xf32> -> vector<16x128xf32>
    %c0_22 = arith.constant 0 : index
    %c0_23 = arith.constant 0 : index
    %32 = vector.load %arg9[%c0_22, %c0_23] : memref<1x128xf32, #tpu.memory_space<vmem>>, vector<1x128xf32>
    %33 = vector.broadcast %32 : vector<1x128xf32> to vector<16x128xf32>
    %34 = arith.addf %31, %33 : vector<16x128xf32>
    %cst_24 = arith.constant 0.000000e+00 : f32
    %35 = vector.broadcast %cst_24 : f32 to vector<16x128xf32>
    %36 = arith.maximumf %34, %35 : vector<16x128xf32>
    %c0_25 = arith.constant 0 : index
    %c0_26 = arith.constant 0 : index
    %c0_27 = arith.constant 0 : index
    %37 = vector.load %arg3[%c0_25, %c0_26, %c0_27] : memref<1x8x16xf32, #tpu.memory_space<vmem>>, vector<1x8x16xf32>
    %38 = vector.shape_cast %37 : vector<1x8x16xf32> to vector<8x16xf32>
    %39 = vector.shape_cast %38 : vector<8x16xf32> to vector<8x16x1xf32>
    %cst_28 = arith.constant 0.000000e+00 : f32
    %40 = vector.broadcast %cst_28 : f32 to vector<8x16x1xf32>
    %41 = arith.cmpf ogt, %39, %40 : vector<8x16x1xf32>
    %42 = vector.shape_cast %36 : vector<16x128xf32> to vector<1x16x128xf32>
    %cst_29 = arith.constant -3.40282347E+38 : f32
    %43 = vector.shape_cast %41 : vector<8x16x1xi1> to vector<8x16x1xi1>
    %44 = vector.broadcast %43 : vector<8x16x1xi1> to vector<8x16x128xi1>
    %45 = vector.shape_cast %42 : vector<1x16x128xf32> to vector<1x16x128xf32>
    %46 = vector.broadcast %45 : vector<1x16x128xf32> to vector<8x16x128xf32>
    %47 = vector.broadcast %cst_29 : f32 to vector<8x16x128xf32>
    %48 = arith.select %44, %46, %47 : vector<8x16x128xi1>, vector<8x16x128xf32>
    %cst_30 = arith.constant dense<0xFF800000> : vector<8x128xf32>
    %49 = vector.multi_reduction <maximumf>, %48, %cst_30 [1] : vector<8x16x128xf32> to vector<8x128xf32>
    %cst_31 = arith.constant dense<0xFF800000> : vector<8xf32>
    %50 = vector.multi_reduction <maximumf>, %38, %cst_31 [1] : vector<8x16xf32> to vector<8xf32>
    %51 = vector.shape_cast %50 : vector<8xf32> to vector<8x1xf32>
    %cst_32 = arith.constant 0.000000e+00 : f32
    %52 = vector.broadcast %cst_32 : f32 to vector<8x1xf32>
    %53 = arith.cmpf ogt, %51, %52 : vector<8x1xf32>
    %cst_33 = arith.constant 0.000000e+00 : f32
    %54 = vector.shape_cast %53 : vector<8x1xi1> to vector<8x1xi1>
    %55 = vector.broadcast %54 : vector<8x1xi1> to vector<8x128xi1>
    %56 = vector.broadcast %cst_33 : f32 to vector<8x128xf32>
    %57 = arith.select %55, %49, %56 : vector<8x128xi1>, vector<8x128xf32>
    %58 = arith.truncf %57 : vector<8x128xf32> to vector<8x128xbf16>
    %c0_34 = arith.constant 0 : index
    %c0_35 = arith.constant 0 : index
    %59 = vector.load %arg10[%c0_34, %c0_35] : memref<128x128xbf16, #tpu.memory_space<vmem>>, vector<128x128xbf16>
    %cst_36 = arith.constant dense<0.000000e+00> : vector<8x128xf32>
    %60 = tpu.matmul %58, %59, %cst_36 {dimension_numbers = #tpu.dot_dimension_numbers<[1], [0], [0], [1], [0, 0, 1, 1], [], []>} : vector<8x128xbf16>, vector<128x128xbf16>, vector<8x128xf32> -> vector<8x128xf32>
    %c0_37 = arith.constant 0 : index
    %c0_38 = arith.constant 0 : index
    %61 = vector.load %arg11[%c0_37, %c0_38] : memref<1x128xf32, #tpu.memory_space<vmem>>, vector<1x128xf32>
    %62 = vector.broadcast %61 : vector<1x128xf32> to vector<8x128xf32>
    %63 = arith.addf %60, %62 : vector<8x128xf32>
    %cst_39 = arith.constant 0.000000e+00 : f32
    %64 = vector.broadcast %cst_39 : f32 to vector<8x128xf32>
    %65 = arith.maximumf %63, %64 : vector<8x128xf32>
    %66 = arith.truncf %65 : vector<8x128xf32> to vector<8x128xbf16>
    %c0_40 = arith.constant 0 : index
    %c0_41 = arith.constant 0 : index
    %67 = vector.load %arg12[%c0_40, %c0_41] : memref<128x128xbf16, #tpu.memory_space<vmem>>, vector<128x128xbf16>
    %cst_42 = arith.constant dense<0.000000e+00> : vector<8x128xf32>
    %68 = tpu.matmul %66, %67, %cst_42 {dimension_numbers = #tpu.dot_dimension_numbers<[1], [0], [0], [1], [0, 0, 1, 1], [], []>} : vector<8x128xbf16>, vector<128x128xbf16>, vector<8x128xf32> -> vector<8x128xf32>
    %c0_43 = arith.constant 0 : index
    %c0_44 = arith.constant 0 : index
    %69 = vector.load %arg13[%c0_43, %c0_44] : memref<1x128xf32, #tpu.memory_space<vmem>>, vector<1x128xf32>
    %70 = vector.broadcast %69 : vector<1x128xf32> to vector<8x128xf32>
    %71 = arith.addf %68, %70 : vector<8x128xf32>
    %72 = arith.negf %71 : vector<8x128xf32>
    %73 = math.exp %72 : vector<8x128xf32>
    %cst_45 = arith.constant 1.000000e+00 : f32
    %74 = vector.broadcast %cst_45 : f32 to vector<8x128xf32>
    %75 = arith.addf %74, %73 : vector<8x128xf32>
    %76 = arith.divf %74, %75 : vector<8x128xf32>
    %c0_46 = arith.constant 0 : index
    %c0_47 = arith.constant 0 : index
    %c0_48 = arith.constant 0 : index
    %77 = vector.load %arg14[%c0_46, %c0_47, %c0_48] : memref<1x8x128xf32, #tpu.memory_space<vmem>>, vector<1x8x128xf32>
    %78 = vector.shape_cast %77 : vector<1x8x128xf32> to vector<8x128xf32>
    %79 = vector.shape_cast %76 : vector<8x128xf32> to vector<1x8x128xf32>
    tpu.vector_store %arg14[%c0_46, %c0_47, %c0_48], %79 {strides = array<i32>} : memref<1x8x128xf32, #tpu.memory_space<vmem>>, vector<1x8x128xf32>,
    return
  }
  func.func @transform_0(%arg0: i32) -> (i32, i32, i32) {
    %c0_i32 = arith.constant 0 : i32
    %c0_i32_0 = arith.constant 0 : i32
    %c0_i32_1 = arith.constant 0 : i32
    return %arg0, %c0_i32, %c0_i32_0 : i32, i32, i32
  }
  func.func @transform_1(%arg0: i32) -> (i32, i32, i32) {
    %c0_i32 = arith.constant 0 : i32
    %c0_i32_0 = arith.constant 0 : i32
    %c0_i32_1 = arith.constant 0 : i32
    return %arg0, %c0_i32, %c0_i32_0 : i32, i32, i32
  }
  func.func @transform_2(%arg0: i32) -> (i32, i32, i32) {
    %c0_i32 = arith.constant 0 : i32
    %c0_i32_0 = arith.constant 0 : i32
    %c0_i32_1 = arith.constant 0 : i32
    return %arg0, %c0_i32, %c0_i32_0 : i32, i32, i32
  }
  func.func @transform_3(%arg0: i32) -> (i32, i32) {
    %c0_i32 = arith.constant 0 : i32
    %c0_i32_0 = arith.constant 0 : i32
    %c0_i32_1 = arith.constant 0 : i32
    return %c0_i32, %c0_i32_0 : i32, i32
  }
  func.func @transform_4(%arg0: i32) -> (i32, i32) {
    %c0_i32 = arith.constant 0 : i32
    %c0_i32_0 = arith.constant 0 : i32
    %c0_i32_1 = arith.constant 0 : i32
    return %c0_i32, %c0_i32_0 : i32, i32
  }
  func.func @transform_5(%arg0: i32) -> (i32, i32) {
    %c0_i32 = arith.constant 0 : i32
    %c0_i32_0 = arith.constant 0 : i32
    %c0_i32_1 = arith.constant 0 : i32
    return %c0_i32, %c0_i32_0 : i32, i32
  }
  func.func @transform_6(%arg0: i32) -> (i32, i32) {
    %c0_i32 = arith.constant 0 : i32
    %c0_i32_0 = arith.constant 0 : i32
    %c0_i32_1 = arith.constant 0 : i32
    return %c0_i32, %c0_i32_0 : i32, i32
  }
  func.func @transform_7(%arg0: i32) -> (i32, i32) {
    %c0_i32 = arith.constant 0 : i32
    %c0_i32_0 = arith.constant 0 : i32
    %c0_i32_1 = arith.constant 0 : i32
    return %c0_i32, %c0_i32_0 : i32, i32
  }
  func.func @transform_8(%arg0: i32) -> (i32, i32) {
    %c0_i32 = arith.constant 0 : i32
    %c0_i32_0 = arith.constant 0 : i32
    %c0_i32_1 = arith.constant 0 : i32
    return %c0_i32, %c0_i32_0 : i32, i32
  }
  func.func @transform_9(%arg0: i32) -> (i32, i32) {
    %c0_i32 = arith.constant 0 : i32
    %c0_i32_0 = arith.constant 0 : i32
    %c0_i32_1 = arith.constant 0 : i32
    return %c0_i32, %c0_i32_0 : i32, i32
  }
  func.func @transform_10(%arg0: i32) -> (i32, i32) {
    %c0_i32 = arith.constant 0 : i32
    %c0_i32_0 = arith.constant 0 : i32
    %c0_i32_1 = arith.constant 0 : i32
    return %c0_i32, %c0_i32_0 : i32, i32
  }
  func.func @transform_11(%arg0: i32) -> (i32, i32) {
    %c0_i32 = arith.constant 0 : i32
    %c0_i32_0 = arith.constant 0 : i32
    %c0_i32_1 = arith.constant 0 : i32
    return %c0_i32, %c0_i32_0 : i32, i32
  }
  func.func @transform_12(%arg0: i32) -> (i32, i32) {
    %c0_i32 = arith.constant 0 : i32
    %c0_i32_0 = arith.constant 0 : i32
    %c0_i32_1 = arith.constant 0 : i32
    return %c0_i32, %c0_i32_0 : i32, i32
  }
  func.func @transform_13(%arg0: i32) -> (i32, i32, i32) {
    %c0_i32 = arith.constant 0 : i32
    %c0_i32_0 = arith.constant 0 : i32
    %c0_i32_1 = arith.constant 0 : i32
    return %arg0, %c0_i32, %c0_i32_0 : i32, i32, i32
  }
}

</mosaic_0001>

<bundles_post_ra>
// kernel: tpu_custom_call.1
= control target key start
LH: loop header
LB: loop body
LE: loop exit
PB: predicated region body
PF: predicated region fallthrough
CT: control target
= control target key end

     0   :  { %s3237_s0 = inlined_call_operand.hbm [shape: f32[4,16,128], index: 0, kind: input, shape index: {}]   ;;  %s3238_s1 = inlined_call_operand.hbm [shape: bf16[4,16,16], index: 1, kind: input, shape index: {}]   ;;  %s3239_s2 = inlined_call_operand.hbm [shape: f32[4,8,16], index: 2, kind: input, shape index: {}]   ;;  %s3240_s3 = inlined_call_operand.hbm [shape: bf16[256,128], index: 3, kind: input, shape index: {}]   ;;  %s3241_s4 = inlined_call_operand.vmem [shape: f32[1,128], index: 4, kind: input, shape index: {}]   ;;  %s3242_s5 = inlined_call_operand.hbm [shape: bf16[256,128], index: 5, kind: input, shape index: {}]   ;;  %s3243_s6 = inlined_call_operand.vmem [shape: f32[1,128], index: 6, kind: input, shape index: {}]   ;;  %s3244_s7 = inlined_call_operand.hbm [shape: bf16[256,128], index: 7, kind: input, shape index: {}]   ;;  %s3245_s8 = inlined_call_operand.vmem [shape: f32[1,128], index: 8, kind: input, shape index: {}]   ;;  %s3246_s9 = inlined_call_operand.hbm [shape: bf16[128,128], index: 9, kind: input, shape index: {}]   ;;  %s3247_s10 = inlined_call_operand.vmem [shape: f32[1,128], index: 10, kind: input, shape index: {}]   ;;  %s3248_s11 = inlined_call_operand.hbm [shape: bf16[128,128], index: 11, kind: input, shape index: {}]   ;;  %s3249_s12 = inlined_call_operand.vmem [shape: f32[1,128], index: 12, kind: input, shape index: {}]   ;;  %s3250_s13 = inlined_call_operand.hbm [shape: f32[4,8,128], index: 13, kind: output, shape index: {}]  }
   0x1   :  { %3277 = sst [smem:[#allocation29_spill]] %s3238_s1 }
   0x2   :  { %3278 = sst [smem:[#allocation30_spill]] %s3240_s3 }
   0x3   :  { %3279 = sst [smem:[#allocation31_spill]] %s3243_s6 }
   0x4   :  { %3280 = sst [smem:[#allocation32_spill]] %s3244_s7 }
   0x5   :  { %3281 = sst [smem:[#allocation33_spill]] %s3245_s8 }
   0x6   :  { %3282 = sst [smem:[#allocation34_spill]] %s3247_s10 }
   0x7   :  { %3283 = sst [smem:[#allocation35_spill]] %s3249_s12 }
   0x8   :  { %3284 = sst [smem:[#allocation36_spill]] %s3250_s13 }
   0x9   :  { %18 = vsyncpa [#allocation3], 0 }
   0xa   :  { %20 = vsyncpa [#allocation3 + $0x1], 0 }
   0xb   :  { %21 = vsyncpa [#allocation6], 0 }
   0xc   :  { %23 = vsyncpa [#allocation6 + $0x1], 0 }
   0xd   :  { %24 = vsyncpa [#allocation9], 0 }
   0xe   :  { %25 = vsyncpa [#allocation12], 0 }
   0xf   :  { %26 = vsyncpa [#allocation15], 0 }
  0x10   :  { %27 = vsyncpa [#allocation4], 0 }
  0x11   :  { %29 = vsyncpa [#allocation4 + $0x1], 0  ;;  %s2767_s25 = smov 0   ;;  %s2769_s26 = smov 0  }
  0x12   :  { %s2771_s27 = smov 0   ;;  %s2773_s28 = smov 0  }
  0x13 LB: > { %3285 = sst [smem:[#allocation23_spill]] %s2668_s25  ;;  %s2682_s29 = smov [#allocation8]   ;;  %s2680_s28 = sphi %s2773_s28, %s3330_s28   ;;  %s2676_s27 = sphi %s2771_s27, %s3335_s27   ;;  %s2672_s26 = sphi %s2769_s26, %s3334_s26   ;;  %s2668_s25 = sphi %s2767_s25, %s3333_s25  }
  0x14   : > { %3286 = sst [smem:[#allocation24_spill]] %s2676_s27  ;;  %s366_s30 = sshll.u32 %s2682_s29, 4  ;;  %s2794_s30 = int_to_ptr.vmem [resolvable:$true] %s366_s30 }
  0x15   : > { %s2788_s14 = sadd.s32 4294967295, %s2680_s28   ;;  %p1930_p0 = scmp.ge.s32.totalorder %s2680_s28, 1 }
  0x16   : > { %p3251_p1 = scmp.eq.s32.totalorder %s2788_s14, 0  ;;  %p341_p2 = scmp.eq.s32.totalorder %s2788_s14, 3 }
  0x17   : > { %p354_p3 = scmp.lt.s32.totalorder %s2680_s28, 5  ;;  %s2683_s16 = smov [#allocation11]  }
  0x18   : > { %s398_s17 = sshll.u32 %s2683_s16, 4  ;;  %s3289_s3 = sld [smem:[#allocation30_spill]]  ;;  %s2802_s17 = int_to_ptr.vmem [resolvable:$true] %s398_s17 }
  0x19   : > { %p2796_p4 = pnand %p1930_p0, %p354_p3 }
  0x1b   : > { %s3287_s15 = scalar_select %p2796_p4, 1, 0 }
  0x1c   : > { %p2214_p5 = pneg %p2796_p4 }
  0x1e   : > { %p2806_p6 = pnand %p2214_p5, %p3251_p1  ;;  %s2368_s21 = scalar_lea.hbm %s3289_s3, 2048 }
  0x1f   : > { %p2369_p7 = scmp.ne.s32.totalorder %s3289_s3, %s2368_s21  ;;  %p2375_p11 = scmp.lt.u32.totalorder %s2368_s21, %s3289_s3 }
  0x20   : > { %s3288_s18 = scalar_select %p2806_p6, 1, 0 }
  0x21   : > { %p2818_p8 = pneg %p2806_p6 }
  0x23   : > { %s3290_s24 = scalar_select %p2818_p8, 1, 0 }
  0x24   : > { %p2371_p9 = pnand %p2818_p8, %p2369_p7 }
  0x26   : > { %p2372_p10 = pneg %p2371_p9 }
  0x28   : > { %p2377_p12 = pnand %p2375_p11, %p2372_p10 }
  0x2a   : > { %2380 = shalt.err (!%p2377_p12)
}
  0x2b   : > { %s2381_s19 = scalar_lea.vmem %s2794_s30, 2048  ;;  %p2389_p5 = scmp.lt.s32.totalorder %s2794_s30, %s2794_s30 }
  0x2c   : > { %p2382_p13 = scmp.ne.s32.totalorder %s2794_s30, %s2381_s19  ;;  %p2390_p1 = scmp.lt.s32.totalorder %s2381_s19, %s2381_s19 }
  0x2e   : > { %p2384_p0 = pnand %p2382_p13, %p2818_p8  ;;  %p2391_p7 = por %p2390_p1, %p2389_p5 }
  0x30   : > { %p2385_p3 = pneg %p2384_p0 }
  0x32   : > { %p2392_p9 = pnand %p2391_p7, %p2385_p3 }
  0x34   : > { %2395 = shalt.err (!%p2392_p9)
}
  0x35   : > { %s3254_s20 = smov 64   ;;  %s3256_s21 = smov 4  }
  0x36   : > { %2217 = dma.hbm_to_vmem [thread:$0]  (!%p2806_p6), %s3289_s3, 2048, %s2794_s30, [#allocation9], %s3254_s20, %s3254_s20, %s3256_s21  }
  0x37   : > { %s3291_s7 = sld [smem:[#allocation32_spill]] }
  0x3d   : > { %s2396_s19 = scalar_lea.hbm %s3291_s7, 2048 }
  0x3e   : > { %p2397_p1 = scmp.ne.s32.totalorder %s3291_s7, %s2396_s19  ;;  %p2403_p12 = scmp.lt.u32.totalorder %s2396_s19, %s3291_s7 }
  0x40   : > { %p2399_p10 = pnand %p2397_p1, %p2818_p8 }
  0x42   : > { %p2400_p11 = pneg %p2399_p10 }
  0x44   : > { %p2405_p13 = pnand %p2403_p12, %p2400_p11 }
  0x46   : > { %2408 = shalt.err (!%p2405_p13)
}
  0x47   : > { %s2409_s30 = scalar_lea.vmem %s2802_s17, 2048  ;;  %p2417_p7 = scmp.lt.s32.totalorder %s2802_s17, %s2802_s17 }
  0x48   : > { %p2410_p0 = scmp.ne.s32.totalorder %s2802_s17, %s2409_s30  ;;  %p2418_p9 = scmp.lt.s32.totalorder %s2409_s30, %s2409_s30 }
  0x4a   : > { %p2412_p3 = pnand %p2410_p0, %p2818_p8  ;;  %p2419_p1 = por %p2418_p9, %p2417_p7 }
  0x4c   : > { %p2413_p5 = pneg %p2412_p3 }
  0x4e   : > { %p2420_p10 = pnand %p2419_p1, %p2413_p5 }
  0x50   : > { %2423 = shalt.err (!%p2420_p10)
}
  0x51   : > { %2223 = dma.hbm_to_vmem [thread:$0]  (!%p2806_p6), %s3291_s7, 2048, %s2802_s17, [#allocation12], %s3254_s20, %s3254_s20, %s3256_s21  }
  0x52   : > { %s1929_s12 = sadd.s32 4294967294, %s2680_s28   ;;  %s2870_s13 = sadd.s32 1, %s2680_s28  }
  0x53   : > { %3292 = sst [smem:[#allocation25_spill]] %s2870_s13  ;;  %s42_s22 = sadd.s32 1, %s2676_s27 }
  0x54   : > { %s39_s23 = ssub.s32 %s2680_s28, %s2870_s13  ;;  %p49_p11 = scmp.ne.s32.totalorder %s2676_s27, %s2672_s26 }
  0x55   : > { %p40_p12 = scmp.eq.s32.totalorder %s39_s23, 0  ;;  %p50_p13 = scmp.eq.s32.totalorder %s2680_s28, 0 }
  0x56   : > { %p55_p0 = scmp.ne.s32.totalorder %s2672_s26, %s2668_s25  ;;  %p2882_p3 = por %p341_p2, %p49_p11 }
  0x57   : > { %s2887_s16 = scalar_select %p40_p12, %s2676_s27, %s42_s22  }
  0x58   : > { %s3293_s29 = scalar_select %p2882_p3, 1, 0 }
  0x59   : > { %3295 = sst [smem:[#allocation27_spill]] %s2887_s16  ;;  %p51_p5 = por %p50_p13, %p49_p11 }
  0x5a   : > { %3294 = sst [smem:[#allocation26_spill]] %s3293_s29  ;;  %p3296_p7 = scmp.eq.s32.totalorder %s2788_s14, 0 }
  0x5b   : > { %p347_p1 = scmp.eq.s32.totalorder %s1929_s12, 3  ;;  %p2249_p10 = scmp.lt.s32.totalorder %s2680_s28, 4 }
  0x5c   : > { %p2891_p9 = por %p3296_p7, %p55_p0  ;;  %s2897_s19 = sand.u32 1, %s2676_s27  }
  0x5d   : > { %s468_s30 = sand.u32 1, %s2680_s28   ;;  %p2900_p4 = por %p347_p1, %p55_p0 }
  0x5e   : > { %s3297_s17 = scalar_select %p2891_p9, 1, 0 }
  0x5f   : > { %s3298_s8 = scalar_select %p2900_p4, 1, 0 }
  0x60   : > { %p2904_p2 = pnand %p2249_p10, %p51_p5  ;;  %s3259_s22 = sshll.u32 %s2897_s19, 3 }
  0x61   : > { %3299 = sst [smem:[#allocation28_spill]] %s3298_s8  ;;  %s3260_s23 = sshll.u32 %s2680_s28, 7 }
  0x62   : > { %s3300_s10 = scalar_select %p2904_p2, 1, 0 }
  0x63   : > { %s472_s20 = scalar_lea.vmem [#allocation5], %s3259_s22  ;;  %s3301_s1 = sld [smem:[#allocation29_spill]] }
  0x64   : > { %s479_s12 = sshll.u32 %s472_s20, 4  ;;  %s2921_s16 = scalar_lea.sflag [#allocation6], %s468_s30  ;;  %s2919_s12 = int_to_ptr.vmem [resolvable:$true] %s479_s12 }
  0x65   : > { %p2927_p12 = pneg %p2904_p2 }
  0x67   : > { %s3302_s22 = scalar_select %p2927_p12, 1, 0 }
  0x69   : > { %s2917_s7 = scalar_lea.hbm %s3301_s1, %s3260_s23  ;;  %s2429_s21 = scalar_lea.hbm %s3301_s1, 512 }
  0x6a   : > { %s2424_s27 = scalar_lea.hbm %s2917_s7, 128  ;;  %p2430_p5 = scmp.lt.u32.totalorder %s2917_s7, %s3301_s1 }
  0x6b   : > { %p2425_p11 = scmp.ne.s32.totalorder %s2917_s7, %s2424_s27  ;;  %p2431_p7 = scmp.lt.u32.totalorder %s2429_s21, %s2424_s27 }
  0x6c   : > { %p2433_p10 = scmp.lt.u32.totalorder %s2424_s27, %s2917_s7 }
  0x6d   : > { %p2427_p13 = pnand %p2927_p12, %p2425_p11  ;;  %p2432_p1 = por %p2431_p7, %p2430_p5 }
  0x6f   : > { %p2428_p0 = pneg %p2427_p13  ;;  %p2434_p4 = por %p2433_p10, %p2432_p1 }
  0x71   : > { %p2435_p3 = pnand %p2434_p4, %p2428_p0 }
  0x73   : > { %2438 = shalt.err (!%p2435_p3)
}
  0x74   : > { %s2439_s30 = scalar_lea.vmem %s2919_s12, 128  ;;  %s2686_s3 = smov [#allocation5]  }
  0x75   : > { %p2440_p11 = scmp.ne.s32.totalorder %s2919_s12, %s2439_s30  ;;  %s2444_s20 = sshll.u32 %s2686_s3, 4  ;;  %s2445_s20 = int_to_ptr.vmem [resolvable:$false] %s2444_s20 }
  0x76   : > { %s2446_s13 = scalar_lea.vmem %s2445_s20, 256  ;;  %p2447_p6 = scmp.lt.s32.totalorder %s2919_s12, %s2445_s20 }
  0x77   : > { %p2442_p13 = pnand %p2440_p11, %p2927_p12  ;;  %p2448_p8 = scmp.lt.s32.totalorder %s2446_s13, %s2439_s30 }
  0x79   : > { %p2443_p9 = pneg %p2442_p13  ;;  %p2449_p5 = por %p2448_p8, %p2447_p6 }
  0x7b   : > { %p2450_p7 = pnand %p2449_p5, %p2443_p9 }
  0x7d   : > { %2453 = shalt.err (!%p2450_p7)
}
  0x7e   : > { %s3303_s27 = smov 4   ;;  %s3304_s23 = smov 64  }
  0x7f   : > { %2236 = dma.hbm_to_vmem [thread:$0]  (!%p2904_p2), %s2917_s7, 128, %s2919_s12, %s2921_s16, %s3304_s23, %s3304_s23, %s3303_s27  }
  0x80   : > { %s2687_s21 = smov [#allocation10]   ;;  %s2688_s3 = smov [#allocation13]  }
  0x81   : > { %s382_s1 = sshll.u32 %s2687_s21, 4  ;;  %s414_s8 = sshll.u32 %s2688_s3, 4  ;;  %s383_s1 = int_to_ptr.vmem [resolvable:$true] %s382_s1  ;;  %s2954_s8 = int_to_ptr.vmem [resolvable:$true] %s414_s8 }
  0x82   : > { %s2454_s13 = scalar_lea.hbm %s3242_s5, 2048  ;;  %p3305_p6 = scmp.ne.s32.totalorder %s3290_s24, 0 }
  0x83   : > { %p2455_p4 = scmp.ne.s32.totalorder %s3242_s5, %s2454_s13  ;;  %p2461_p9 = scmp.lt.u32.totalorder %s2454_s13, %s3242_s5 }
  0x85   : > { %p2457_p8 = pnand %p2455_p4, %p3305_p6 }
  0x87   : > { %p2458_p3 = pneg %p2457_p8 }
  0x89   : > { %p2463_p0 = pnand %p2461_p9, %p2458_p3 }
  0x8b   : > { %2466 = shalt.err (!%p2463_p0)
}
  0x8c   : > { %s2467_s12 = scalar_lea.vmem %s383_s1, 2048  ;;  %p2475_p13 = scmp.lt.s32.totalorder %s383_s1, %s383_s1 }
  0x8d   : > { %p2468_p1 = scmp.ne.s32.totalorder %s383_s1, %s2467_s12  ;;  %p2476_p5 = scmp.lt.s32.totalorder %s2467_s12, %s2467_s12 }
  0x8f   : > { %p2470_p10 = pnand %p2468_p1, %p3305_p6  ;;  %p2477_p7 = por %p2476_p5, %p2475_p13 }
  0x91   : > { %p2471_p11 = pneg %p2470_p10 }
  0x93   : > { %p2478_p2 = pnand %p2477_p7, %p2471_p11 }
  0x95   : > { %2481 = shalt.err (!%p2478_p2)
}
  0x96   : > { %p3306_p4 = scmp.ne.s32.totalorder %s3288_s18, 0  ;;  %s2482_s3 = scalar_lea.hbm %s3246_s9, 1024 }
  0x97   : > { %p2483_p8 = scmp.ne.s32.totalorder %s3246_s9, %s2482_s3  ;;  %p2489_p9 = scmp.lt.u32.totalorder %s2482_s3, %s3246_s9 }
  0x98   : > { %2220 = dma.hbm_to_vmem [thread:$0]  (!%p3306_p4), %s3242_s5, 2048, %s383_s1, [#allocation9], %s3304_s23, %s3304_s23, %s3303_s27  }
  0x99   : > { %p2485_p2 = pnand %p2483_p8, %p3305_p6 }
  0x9b   : > { %p2486_p3 = pneg %p2485_p2 }
  0x9d   : > { %p2491_p0 = pnand %p2489_p9, %p2486_p3 }
  0x9f   : > { %2494 = shalt.err (!%p2491_p0)
}
  0xa0   : > { %s2495_s1 = scalar_lea.vmem %s2954_s8, 1024  ;;  %p2503_p13 = scmp.lt.s32.totalorder %s2954_s8, %s2954_s8 }
  0xa1   : > { %p2496_p1 = scmp.ne.s32.totalorder %s2954_s8, %s2495_s1  ;;  %p2504_p5 = scmp.lt.s32.totalorder %s2495_s1, %s2495_s1 }
  0xa3   : > { %p2498_p10 = pnand %p2496_p1, %p3305_p6  ;;  %p2505_p7 = por %p2504_p5, %p2503_p13 }
  0xa5   : > { %p2499_p11 = pneg %p2498_p10 }
  0xa7   : > { %p2506_p8 = pnand %p2505_p7, %p2499_p11 }
  0xa9   : > { %2509 = shalt.err (!%p2506_p8)
}
  0xaa   : > { %2226 = dma.hbm_to_vmem [thread:$0]  (!%p3306_p4), %s3246_s9, 1024, %s2954_s8, [#allocation12], %s3304_s23, %s3304_s23, %s3303_s27  }
  0xab   : > { %s2689_s25 = smov [#allocation14]   ;;  %s1937_s21 = sshll.u32 %s2897_s19, 4 }
  0xac   : > { %s430_s29 = sshll.u32 %s2689_s25, 4  ;;  %s2510_s20 = scalar_lea.hbm %s3248_s11, 1024  ;;  %s431_s29 = int_to_ptr.vmem [resolvable:$true] %s430_s29 }
  0xad   : > { %p2511_p2 = scmp.ne.s32.totalorder %s3248_s11, %s2510_s20  ;;  %p2517_p0 = scmp.lt.u32.totalorder %s2510_s20, %s3248_s11 }
  0xaf   : > { %p2513_p3 = pnand %p2511_p2, %p3305_p6 }
  0xb1   : > { %p2514_p9 = pneg %p2513_p3 }
  0xb3   : > { %p2519_p1 = pnand %p2517_p0, %p2514_p9 }
  0xb5   : > { %2522 = shalt.err (!%p2519_p1)
}
  0xb6   : > { %s2523_s8 = scalar_lea.vmem %s431_s29, 1024  ;;  %p2531_p5 = scmp.lt.s32.totalorder %s431_s29, %s431_s29 }
  0xb7   : > { %p2524_p10 = scmp.ne.s32.totalorder %s431_s29, %s2523_s8  ;;  %p2532_p7 = scmp.lt.s32.totalorder %s2523_s8, %s2523_s8 }
  0xb9   : > { %p2526_p11 = pnand %p2524_p10, %p3305_p6  ;;  %p2533_p8 = por %p2532_p7, %p2531_p5 }
  0xbb   : > { %p2527_p13 = pneg %p2526_p11 }
  0xbd   : > { %p2534_p12 = pnand %p2533_p8, %p2527_p13 }
  0xbf   : > { %2537 = shalt.err (!%p2534_p12)
}
  0xc0   : > { %2229 = dma.hbm_to_vmem [thread:$0]  (!%p3306_p4), %s3248_s11, 1024, %s431_s29, [#allocation15], %s3304_s23, %s3304_s23, %s3303_s27  }
  0xc1   : > { %s2036_s24 = sshll.u32 %s2680_s28, 8  ;;  %s451_s3 = scalar_lea.vmem [#allocation2], %s1937_s21 }
  0xc2   : > { %s458_s30 = sshll.u32 %s451_s3, 4  ;;  %s3029_s7 = scalar_lea.hbm %s3237_s0, %s2036_s24  ;;  %s3031_s30 = int_to_ptr.vmem [resolvable:$true] %s458_s30 }
  0xc3   : > { %s448_s18 = scalar_lea.sflag [#allocation3], %s2897_s19  ;;  %s2538_s1 = scalar_lea.hbm %s3029_s7, 256 }
  0xc4   : > { %p2539_p12 = scmp.ne.s32.totalorder %s3029_s7, %s2538_s1  ;;  %p3307_p6 = scmp.ne.s32.totalorder %s3302_s22, 0 }
  0xc5   : > { %s2543_s29 = scalar_lea.hbm %s3237_s0, 1024  ;;  %p2544_p3 = scmp.lt.u32.totalorder %s3029_s7, %s3237_s0 }
  0xc6   : > { %p2541_p2 = pnand %p2539_p12, %p3307_p6  ;;  %p2545_p9 = scmp.lt.u32.totalorder %s2543_s29, %s2538_s1 }
  0xc7   : > { %p2547_p1 = scmp.lt.u32.totalorder %s2538_s1, %s3029_s7 }
  0xc8   : > { %p2542_p4 = pneg %p2541_p2  ;;  %p2546_p0 = por %p2545_p9, %p2544_p3 }
  0xca   : > { %p2548_p10 = por %p2547_p1, %p2546_p0 }
  0xcc   : > { %p2549_p11 = pnand %p2548_p10, %p2542_p4 }
  0xce   : > { %2552 = shalt.err (!%p2549_p11)
}
  0xcf   : > { %s2553_s8 = scalar_lea.vmem %s3031_s30, 256  ;;  %s2690_s6 = smov [#allocation2]  }
  0xd0   : > { %p2554_p13 = scmp.ne.s32.totalorder %s3031_s30, %s2553_s8  ;;  %s2558_s25 = sshll.u32 %s2690_s6, 4  ;;  %s2559_s25 = int_to_ptr.vmem [resolvable:$false] %s2558_s25 }
  0xd1   : > { %s2560_s24 = scalar_lea.vmem %s2559_s25, 512  ;;  %p2561_p8 = scmp.lt.s32.totalorder %s3031_s30, %s2559_s25 }
  0xd2   : > { %p2556_p5 = pnand %p2554_p13, %p3307_p6  ;;  %p2562_p12 = scmp.lt.s32.totalorder %s2560_s24, %s2553_s8 }
  0xd4   : > { %p2557_p7 = pneg %p2556_p5  ;;  %p2563_p2 = por %p2562_p12, %p2561_p8 }
  0xd6   : > { %p2564_p3 = pnand %p2563_p2, %p2557_p7 }
  0xd8   : > { %2567 = shalt.err (!%p2564_p3)
}
  0xd9   : > { %s2691_s3 = smov 128   ;;  %s2692_s20 = smov 8  }
  0xda   : > { %p3308_p4 = scmp.ne.s32.totalorder %s3300_s10, 0  ;;  %s3309_s13 = sshll.u32 %s2680_s28, 7 }
  0xdb   : > { %s3062_s23 = scalar_lea.hbm %s3239_s2, %s3309_s13  ;;  %s3310_s29 = sshll.u32 %s2897_s19, 3 }
  0xdc   : > { %2233 = dma.hbm_to_vmem [thread:$0]  (!%p3308_p4), %s3029_s7, 256, %s3031_s30, %s448_s18, %s2691_s3, %s2691_s3, %s2692_s20  }
  0xdd   : > { %s493_s21 = scalar_lea.vmem [#allocation7], %s3310_s29  ;;  %s2568_s8 = scalar_lea.hbm %s3062_s23, 128 }
  0xde   : > { %s500_s12 = sshll.u32 %s493_s21, 4  ;;  %p2569_p9 = scmp.ne.s32.totalorder %s3062_s23, %s2568_s8  ;;  %s501_s12 = int_to_ptr.vmem [resolvable:$true] %s500_s12 }
  0xdf   : > { %s2573_s18 = scalar_lea.hbm %s3239_s2, 512  ;;  %p2574_p10 = scmp.lt.u32.totalorder %s3062_s23, %s3239_s2 }
  0xe0   : > { %p2571_p0 = pnand %p2569_p9, %p3307_p6  ;;  %p2575_p11 = scmp.lt.u32.totalorder %s2573_s18, %s2568_s8 }
  0xe1   : > { %p2577_p5 = scmp.lt.u32.totalorder %s2568_s8, %s3062_s23 }
  0xe2   : > { %p2572_p1 = pneg %p2571_p0  ;;  %p2576_p13 = por %p2575_p11, %p2574_p10 }
  0xe4   : > { %p2578_p7 = por %p2577_p5, %p2576_p13 }
  0xe6   : > { %p2579_p8 = pnand %p2578_p7, %p2572_p1 }
  0xe8   : > { %2582 = shalt.err (!%p2579_p8)
}
  0xe9   : > { %s2583_s19 = scalar_lea.vmem %s501_s12, 128  ;;  %s2693_s24 = smov [#allocation7]  }
  0xea   : > { %p2584_p12 = scmp.ne.s32.totalorder %s501_s12, %s2583_s19  ;;  %s2588_s3 = sshll.u32 %s2693_s24, 4  ;;  %s2589_s3 = int_to_ptr.vmem [resolvable:$false] %s2588_s3 }
  0xeb   : > { %s2590_s20 = scalar_lea.vmem %s2589_s3, 256  ;;  %p2591_p9 = scmp.lt.s32.totalorder %s501_s12, %s2589_s3 }
  0xec   : > { %p2586_p2 = pnand %p2584_p12, %p3307_p6  ;;  %p2592_p0 = scmp.lt.s32.totalorder %s2590_s20, %s2583_s19 }
  0xee   : > { %p2587_p3 = pneg %p2586_p2  ;;  %p2593_p4 = por %p2592_p0, %p2591_p9 }
  0xf0   : > { %p2594_p10 = pnand %p2593_p4, %p2587_p3 }
  0xf2   : > { %2597 = shalt.err (!%p2594_p10)
}
  0xf3   : > { %p3311_p11 = scmp.ne.s32.totalorder %s3300_s10, 0  ;;  %p3312_p1 = scmp.ne.s32.totalorder %s3287_s15, 0 }
  0xf4   : > { %s3087_s22 = sand.u32 (!%p3312_p1), 1, %s2672_s26   ;;  %p3313_p6 = scmp.ne.s32.totalorder (!%p3312_p1), %s3297_s17, 0 }
  0xf5   : > { %2239 = dma.hbm_to_vmem [thread:$0]  (!%p3311_p11), %s3062_s23, 128, %s501_s12, %s2921_s16  }
  0xf6   : > { %509 = sbr.rel (%p3312_p1) target bundleno = 2090 (0x82a), region = 72  ;;  %s1946_s13 = sshll.u32 (!%p3312_p1), %s3087_s22, 4 }
  0xf7   : > { %s512_s1 = scalar_lea.sflag (!%p3312_p1), [#allocation3], %s3087_s22  ;;  %s515_s27 = scalar_lea.vmem (!%p3312_p1), [#allocation2], %s1946_s13 }
  0xfd   : > { %2643 = dma.done.wait (%p3313_p6), %s512_s1, 256  }
  0xfe   : > { %2645 = vsyncadd (%p3313_p6), %s512_s1, 4294967040  ;;  %s520_s16 = sand.u32 1, %s2788_s14   ;;  %s3097_s15 = sshll.u32 %s3087_s22, 3 }
  0xff   : > { %s521_s10 = scalar_lea.sflag [#allocation6], %s520_s16  ;;  %s524_s23 = scalar_lea.vmem [#allocation5], %s3097_s15 }
 0x100   : > { %2647 = dma.done.wait (%p3313_p6), %s521_s10, 256  }
 0x101   : > { %2649 = vsyncadd (%p3313_p6), %s521_s10, 4294967040  ;;  %s533_s29 = scalar_lea.vmem [#allocation7], %s3097_s15  ;;  %p3314_p4 = scmp.eq.s32.totalorder %s2788_s14, 0 }
 0x103   : > { %2651 = dma.done.wait (%p3314_p4), [#allocation9], 4096   ;;  %p3315_p13 = pmov %p3314_p4 }
 0x104   : > { %p3316_p5 = pmov %p3314_p4 }
 0x105   : > { %2653 = vsyncadd (%p3315_p13), [#allocation9], 4294963200 }
 0x106   : > { %2655 = dma.done.wait (%p3316_p5), [#allocation12], 3072   ;;  %p3317_p7 = pmov %p3314_p4 }
 0x107   : > { %p3318_p8 = pmov %p3314_p4 }
 0x108   : > { %2657 = vsyncadd (%p3317_p7), [#allocation12], 4294964224 }
 0x109   : > { %2659 = dma.done.wait (%p3318_p8), [#allocation15], 1024   ;;  %p3319_p12 = pmov %p3314_p4 }
 0x10a   : > { %v2694_v0 = vmov 0.0   ;;  %vm2695_vm0 = vmmov 0   ;;  %v609_v1 = vld [vmem:[%s515_s27] sm:$0xff]  ;;  %v610_v2 = vld [vmem:[%s515_s27 + $0x8] sm:$0xff]  ;;  %vm617_vm1 = vcmask 130048   ;;  %s3320_s30 = sld [smem:[#allocation31_spill]] }
 0x10b   : > { %2661 = vsyncadd (%p3319_p12), [#allocation15], 4294966272  ;;  %2128 = vmatprep.subr.bf16.mxu0 %v2694_v0  ;;  %2130 = vmatprep.mubr.msk.bf16.mxu0 %vm2695_vm0, %v2694_v0  ;;  %v611_v3 = vpack.c.bf16 %v610_v2, %v609_v1  ;;  %v3120_v4 = vld [vmem:[%s524_s23] sm:$0xff]   ;;  %v2304_v9 = vld [vmem:[#allocation8 + $0x50] sm:$0xff]   ;;  %s3321_s6 = sld [smem:[#allocation33_spill]]  ;;  %s3322_s24 = sld [smem:[#allocation34_spill]] }
 0x10c   : > { %v2300_v5 = vld [vmem:[#allocation8 + $0x40] sm:$0xff]   ;;  %v2302_v7 = vld [vmem:[#allocation8 + $0x48] sm:$0xff]   ;;  %v2305_v10 = vld [vmem:[#allocation8 + $0x10] sm:$0xff]   ;;  %s3323_s13 = sld [smem:[#allocation35_spill]]  ;;  %s3324_s1 = sld [smem:[#allocation26_spill]] }
 0x10d   : > { %2129 = vmatpush3.bf16.msra.mxu0 %v611_v3  ;;  %v2301_v6 = vld [vmem:[#allocation8] sm:$0xff]   ;;  %830 = vmatprep.mubr.bf16.mxu1 %v611_v3  ;;  %v2303_v8 = vld [vmem:[#allocation8 + $0x8] sm:$0xff]   ;;  %v2306_v11 = vld [vmem:[#allocation8 + $0x58] sm:$0xff]   ;;  %s2033_s27 = sshll.u32 %s2788_s14, 7  ;;  %s605_s16 = scalar_lea.vmem [#allocation16], %s3097_s15 }
 0x10e   : > { %2040 = vmatprep.subr.bf16.mxu1 %v2300_v5  ;;  %2134 = vmatprep.subr.bf16.mxu0 %v2694_v0  ;;  %v2307_v12 = vld [vmem:[#allocation8 + $0x18] sm:$0xff]   ;;  %v2308_v13 = vld [vmem:[#allocation8 + $0x60] sm:$0xff]   ;;  %v2310_v15 = vld [vmem:[#allocation8 + $0x68] sm:$0xff]   ;;  %s1768_s10 = sshll.u32 %s605_s16, 4  ;;  %s3325_s17 = sld [smem:[#allocation36_spill]]  ;;  %s3196_s10 = int_to_ptr.vmem [resolvable:$true] %s1768_s10 }
 0x10f   : > { %2041 = vmatpush3.bf16.msra.mxu1 %v2301_v6  ;;  %v2309_v14 = vld [vmem:[#allocation8 + $0x20] sm:$0xff]   ;;  %v2311_v16 = vld [vmem:[#allocation8 + $0x28] sm:$0xff]   ;;  %v2312_v17 = vld [vmem:[#allocation8 + $0x70] sm:$0xff]   ;;  %s1755_s12 = scalar_lea.sflag [#allocation4], %s3087_s22  ;;  %s2598_s8 = scalar_lea.vmem %s3196_s10, 128 }
 0x110   : > { %2131 = vmatmul.mubr.msk.bf16.vlgmr.msra.gmra.mrb[0].mxu0 %vm617_vm1, %v3120_v4  ;;  %2042 = vmatprep.subr.bf16.mxu1 %v2302_v7  ;;  %v2313_v18 = vld [vmem:[#allocation8 + $0x30] sm:$0xff]   ;;  %v2314_v19 = vld [vmem:[#allocation8 + $0x78] sm:$0xff]   ;;  %v1957_v27 = vld [vmem:[%s3241_s4] ss:$0 sm:$0xff]  ;;  %p2599_p2 = scmp.ne.s32.totalorder %s3196_s10, %s2598_s8  ;;  %s2696_s14 = smov [#allocation16]  }
 0x111   : > { %2136 = vmatprep.mubr.msk.bf16.mxu0 %vm2695_vm0, %v2694_v0  ;;  %v2315_v20 = vld [vmem:[#allocation8 + $0x38] sm:$0xff]   ;;  %v2316_v37 = vld [vmem:[#allocation10 + $0x40] sm:$0xff]   ;;  %v2318_v40 = vld [vmem:[#allocation10 + $0x48] sm:$0xff]   ;;  %s2602_s15 = sshll.u32 %s2696_s14, 4  ;;  %s2603_s15 = int_to_ptr.vmem [resolvable:$false] %s2602_s15 }
 0x112   : > { %v2317_v39 = vld [vmem:[#allocation10] sm:$0xff]   ;;  %v2319_v41 = vld [vmem:[#allocation10 + $0x8] sm:$0xff]   ;;  %v2320_v42 = vld [vmem:[#allocation10 + $0x50] sm:$0xff]   ;;  %p3326_p3 = scmp.ne.s32.totalorder %s3324_s1, 0  ;;  %p2605_p10 = scmp.lt.s32.totalorder %s3196_s10, %s2603_s15 }
 0x113   : > { %2043 = vmatpush3.bf16.msra.mxu1 %v2303_v8  ;;  %v2321_v43 = vld [vmem:[#allocation10 + $0x10] sm:$0xff]   ;;  %v2322_v44 = vld [vmem:[#allocation10 + $0x58] sm:$0xff]   ;;  %v2324_v46 = vld [vmem:[#allocation10 + $0x60] sm:$0xff]  }
 0x114   : > { %2044 = vmatprep.subr.bf16.mxu1 %v2304_v9  ;;  %v2323_v45 = vld [vmem:[#allocation10 + $0x18] sm:$0xff]   ;;  %v2325_v47 = vld [vmem:[#allocation10 + $0x20] sm:$0xff]   ;;  %v2326_v48 = vld [vmem:[#allocation10 + $0x68] sm:$0xff]   ;;  %s3194_s21 = scalar_lea.hbm %s3325_s17, %s2033_s27  ;;  %p2600_p9 = pnand %p2599_p2, %p3326_p3 }
 0x115   : > { %v2327_v49 = vld [vmem:[#allocation10 + $0x28] sm:$0xff]   ;;  %v2328_v50 = vld [vmem:[#allocation10 + $0x70] sm:$0xff]   ;;  %v2330_v52 = vld [vmem:[#allocation10 + $0x78] sm:$0xff]  }
 0x116   : > { %v2329_v51 = vld [vmem:[#allocation10 + $0x30] sm:$0xff]   ;;  %v2331_v53 = vld [vmem:[#allocation10 + $0x38] sm:$0xff]   ;;  %v2332_v59 = vld [vmem:[#allocation11 + $0x40] sm:$0xff]   ;;  %p2601_p0 = pneg %p2600_p9 }
 0x117   : > { %2045 = vmatpush3.bf16.msra.mxu1 %v2305_v10  ;;  %v2333_v60 = vld [vmem:[#allocation11] sm:$0xff]   ;;  %v2334_v61 = vld [vmem:[#allocation11 + $0x48] sm:$0xff]   ;;  %v2336_v63 = vld [vmem:[#allocation11 + $0x50] sm:$0xff]  }
 0x118   : > { %2046 = vmatprep.subr.bf16.mxu1 %v2306_v11  ;;  %v2335_v62 = vld [vmem:[#allocation11 + $0x8] sm:$0xff]   ;;  %v2337_v1 = vld [vmem:[#allocation11 + $0x10] sm:$0xff]   ;;  %v2338_v2 = vld [vmem:[#allocation11 + $0x58] sm:$0xff]  }
 0x119   : > { %v2339_v3 = vld [vmem:[#allocation11 + $0x18] sm:$0xff]   ;;  %v2340_v5 = vld [vmem:[#allocation11 + $0x60] sm:$0xff]   ;;  %v2342_v7 = vld [vmem:[#allocation11 + $0x68] sm:$0xff]  }
 0x11a   : > { %v2341_v6 = vld [vmem:[#allocation11 + $0x20] sm:$0xff]   ;;  %v2343_v8 = vld [vmem:[#allocation11 + $0x28] sm:$0xff]   ;;  %v2344_v9 = vld [vmem:[#allocation11 + $0x70] sm:$0xff]  }
 0x11b   : > { %2047 = vmatpush3.bf16.msra.mxu1 %v2307_v12  ;;  %v2345_v10 = vld [vmem:[#allocation11 + $0x30] sm:$0xff]   ;;  %v1975_v12 = vld [vmem:[%s3320_s30] ss:$0 sm:$0xff]  ;;  %s2604_s30 = scalar_lea.vmem %s2603_s15, 256 }
 0x11c   : > { %2048 = vmatprep.subr.bf16.mxu1 %v2308_v13  ;;  %p2606_p11 = scmp.lt.s32.totalorder %s2604_s30, %s2598_s8 }
 0x11e   : > { %p2607_p1 = por %p2606_p11, %p2605_p10 }
 0x11f   : > { %2049 = vmatpush3.bf16.msra.mxu1 %v2309_v14 }
 0x120   : > { %2050 = vmatprep.subr.bf16.mxu1 %v2310_v15  ;;  %p2608_p6 = pnand %p2607_p1, %p2601_p0 }
 0x123   : > { %2051 = vmatpush3.bf16.msra.mxu1 %v2311_v16 }
 0x124   : > { %2052 = vmatprep.subr.bf16.mxu1 %v2312_v17 }
 0x127   : > { %2053 = vmatpush3.bf16.msra.mxu1 %v2313_v18 }
 0x128   : > { %2054 = vmatprep.subr.bf16.mxu1 %v2314_v19 }
 0x12b   : > { %2055 = vmatpush3.bf16.msra.mxu1 %v2315_v20 }
 0x12c   : > { %2088 = vmatprep.subr.bf16.mxu1 %v2332_v59  ;;  %v2358_v59 = vld [vmem:[#allocation14 + $0x10] sm:$0xff]  }
 0x1e3   : > { %v655_v21 = vpop.f32.mrb[0].mxu0 }
 0x1e4   : > { %v2132_v22 = vpop.f32.mrb[1].mxu0 }
 0x1e5   : > { %v658_v23 = vpop.f32.mrb[2].mxu0 }
 0x1e6   : > { %v662_v24 = vpack.c.bf16 %v658_v23, %v655_v21  ;;  %v2133_v25 = vpop.f32.mrb[3].mxu0  ;;  %v2346_v23 = vld [vmem:[#allocation11 + $0x78] sm:$0xff]  }
 0x1e7   : > { %v1284_v25 = vlaneseq }
 0x1e8   : > { %831 = vmatmul.mubr.bf16.vlgmr.msra.gmra.mrb[0].mxu1 %v662_v24  ;;  %v2347_v24 = vld [vmem:[#allocation11 + $0x38] sm:$0xff]  }
 0x1e9   : > { %2089 = vmatpush3.bf16.msra.mxu1 %v2333_v60  ;;  %v2359_v60 = vld [vmem:[#allocation14 + $0x18] sm:$0xff]  }
 0x1ea   : > { %2090 = vmatprep.subr.bf16.mxu1 %v2334_v61  ;;  %v2360_v61 = vld [vmem:[#allocation14 + $0x20] sm:$0xff]  }
 0x1ed   : > { %2091 = vmatpush3.bf16.msra.mxu1 %v2335_v62  ;;  %v2361_v62 = vld [vmem:[#allocation14 + $0x28] sm:$0xff]  }
 0x1ee   : > { %2092 = vmatprep.subr.bf16.mxu1 %v2336_v63 }
 0x1f1   : > { %2093 = vmatpush3.bf16.msra.mxu1 %v2337_v1 }
 0x1f2   : > { %2094 = vmatprep.subr.bf16.mxu1 %v2338_v2 }
 0x1f5   : > { %2095 = vmatpush3.bf16.msra.mxu1 %v2339_v3 }
 0x1f6   : > { %2096 = vmatprep.subr.bf16.mxu1 %v2340_v5 }
 0x1f9   : > { %2097 = vmatpush3.bf16.msra.mxu1 %v2341_v6 }
 0x1fa   : > { %2098 = vmatprep.subr.bf16.mxu1 %v2342_v7 }
 0x1fd   : > { %2099 = vmatpush3.bf16.msra.mxu1 %v2343_v8 }
 0x1fe   : > { %2100 = vmatprep.subr.bf16.mxu1 %v2344_v9 }
 0x201   : > { %2101 = vmatpush3.bf16.msra.mxu1 %v2345_v10 }
 0x202   : > { %2102 = vmatprep.subr.bf16.mxu1 %v2346_v23 }
 0x205   : > { %2103 = vmatpush3.bf16.msra.mxu1 %v2347_v24 }
 0x206   : > { %2166 = vmatprep.subr.bf16.mxu1 %v2694_v0 }
 0x2bb   : > { %v2056_v26 = vpop.f32.mrb[0].mxu1 }
 0x2bc   : > { %v2057_v28 = vpop.f32.mrb[1].mxu1 }
 0x2bd   : > { %v2058_v29 = vadd.f32 %v2057_v28, %v2056_v26  ;;  %v2059_v30 = vpop.f32.mrb[2].mxu1  ;;  %v1285_v26 = vshrl.u32 %v1284_v25, 7 }
 0x2be   : > { %v2060_v31 = vpop.f32.mrb[3].mxu1 }
 0x2bf   : > { %v833_v32 = vadd.f32 %v2058_v29, %v1957_v27  ;;  %v2061_v33 = vadd.f32 %v2060_v31, %v2059_v30  ;;  %v1286_v28 = vsub.s32 0, %v1285_v26  ;;  %v1297_v29 = vsub.s32 1, %v1285_v26 }
 0x2c1   : > { %v836_v34 = vadd.f32 %v2061_v33, %v1957_v27  ;;  %v839_v35 = vmax.f32 %v833_v32, 0.0  ;;  %v1283_v27 = vld [vmem:[%s533_s29] sm:$0xff]  ;;  %v1308_v32 = vsub.s32 2, %v1285_v26  ;;  %v1319_v33 = vsub.s32 3, %v1285_v26 }
 0x2c2   : > { %v1287_v30 = vrot.slane %v1283_v27, %v1286_v28  ;;  %v1298_v31 = vrot.slane %v1283_v27, %v1297_v29 }
 0x2c3   : > { %v840_v36 = vmax.f32 %v836_v34, 0.0  ;;  %v1320_v34 = vrot.slane %v1283_v27, %v1319_v33 }
 0x2c4   : > { %1289 = vbcast.lane.b32.xlu0 %v1287_v30, 256  ;;  %1300 = vbcast.lane.b32.xlu1 %v1298_v31, 256 }
 0x2c5   : > { %v841_v38 = vpack.c.bf16 %v840_v36, %v839_v35  ;;  %v1330_v35 = vsub.s32 4, %v1285_v26 }
 0x2c7   : > { %2135 = vmatpush3.bf16.msra.mxu0 %v841_v38  ;;  %v1331_v36 = vrot.slane %v1283_v27, %v1330_v35 }
 0x2c8   : > { %2064 = vmatprep.subr.bf16.mxu0 %v2316_v37  ;;  %1293 = vbcast.lane.b32.xlu0 %v1287_v30, 264  ;;  %v1341_v37 = vsub.s32 5, %v1285_v26 }
 0x2c9   : > { %1304 = vbcast.lane.b32.xlu1 %v1298_v31, 264 }
 0x2ca   : > { %2137 = vmatmul.mubr.msk.bf16.vlgmr.msra.gmra.mrb[4].mxu0 %vm617_vm1, %v3120_v4 }
 0x2cb   : > { %1051 = vmatprep.mubr.bf16.mxu0 %v841_v38  ;;  %2065 = vmatpush3.bf16.msra.mxu0 %v2317_v39  ;;  %v1342_v38 = vrot.slane %v1283_v27, %v1341_v37  ;;  %v1352_v39 = vsub.s32 6, %v1285_v26 }
 0x2cc   : > { %2066 = vmatprep.subr.bf16.mxu0 %v2318_v40 }
 0x2cd   : > { %v1353_v40 = vrot.slane %v1283_v27, %v1352_v39 }
 0x2cf   : > { %2067 = vmatpush3.bf16.msra.mxu0 %v2319_v41  ;;  %v1363_v41 = vsub.s32 7, %v1285_v26 }
 0x2d0   : > { %2068 = vmatprep.subr.bf16.mxu0 %v2320_v42 }
 0x2d1   : > { %v1364_v42 = vrot.slane %v1283_v27, %v1363_v41 }
 0x2d3   : > { %2069 = vmatpush3.bf16.msra.mxu0 %v2321_v43  ;;  %v1492_v43 = vsel %vm617_vm1, %v1283_v27, -inf }
 0x2d4   : > { %2070 = vmatprep.subr.bf16.mxu0 %v2322_v44 }
 0x2d7   : > { %2071 = vmatpush3.bf16.msra.mxu0 %v2323_v45 }
 0x2d8   : > { %2072 = vmatprep.subr.bf16.mxu0 %v2324_v46 }
 0x2db   : > { %2073 = vmatpush3.bf16.msra.mxu0 %v2325_v47 }
 0x2dc   : > { %2074 = vmatprep.subr.bf16.mxu0 %v2326_v48 }
 0x2df   : > { %2075 = vmatpush3.bf16.msra.mxu0 %v2327_v49  ;;  %v2348_v49 = vld [vmem:[#allocation13] sm:$0xff]  }
 0x2e0   : > { %2076 = vmatprep.subr.bf16.mxu0 %v2328_v50  ;;  %v2349_v50 = vld [vmem:[#allocation13 + $0x8] sm:$0xff]  }
 0x2e3   : > { %2077 = vmatpush3.bf16.msra.mxu0 %v2329_v51  ;;  %v2350_v51 = vld [vmem:[#allocation13 + $0x10] sm:$0xff]  }
 0x2e4   : > { %2078 = vmatprep.subr.bf16.mxu0 %v2330_v52  ;;  %v2351_v52 = vld [vmem:[#allocation13 + $0x18] sm:$0xff]  }
 0x2e7   : > { %2079 = vmatpush3.bf16.msra.mxu0 %v2331_v53  ;;  %v2352_v53 = vld [vmem:[#allocation13 + $0x20] sm:$0xff]  }
 0x2e8   : > { %2140 = vmatprep.subr.bf16.mxu0 %v2694_v0 }
 0x336   : > { %v1290_v63 = vpop.permute.xlu0 %1289  ;;  %v1301_v1 = vpop.permute.xlu1 %1300 }
 0x337   : > { %vm1372_vm2 = vcmp.gt.f32.partialorder %v1290_v63, 0.0  ;;  %vm1374_vm4 = vcmp.gt.f32.partialorder %v1301_v1, 0.0 }
 0x33a   : > { %v1294_v2 = vpop.permute.xlu0 %1293 }
 0x33b   : > { %v1305_v3 = vpop.permute.xlu1 %1304  ;;  %vm1373_vm3 = vcmp.gt.f32.partialorder %v1294_v2, 0.0 }
 0x33c   : > { %vm1375_vm6 = vcmp.gt.f32.partialorder %v1305_v3, 0.0 }
 0x39d   : > { %v876_v54 = vpop.f32.mrb[4].mxu0 }
 0x39e   : > { %v2138_v55 = vpop.f32.mrb[5].mxu0 }
 0x39f   : > { %v879_v56 = vpop.f32.mrb[6].mxu0  ;;  %v2354_v55 = vld [vmem:[#allocation13 + $0x30] sm:$0xff]  }
 0x3a0   : > { %v883_v57 = vpack.c.bf16 %v879_v56, %v876_v54  ;;  %v2139_v58 = vpop.f32.mrb[7].mxu0  ;;  %v2353_v54 = vld [vmem:[#allocation13 + $0x28] sm:$0xff]   ;;  %v2355_v56 = vld [vmem:[#allocation13 + $0x38] sm:$0xff]  }
 0x3a1   : > { %v2357_v58 = vld [vmem:[#allocation14 + $0x8] sm:$0xff]  }
 0x3a2   : > { %1052 = vmatmul.mubr.bf16.vlgmr.msra.gmra.mrb[8].mxu0 %v883_v57  ;;  %v2356_v57 = vld [vmem:[#allocation14] sm:$0xff]  }
 0x3a3   : > { %2142 = vmatprep.mubr.msk.bf16.mxu0 %vm2695_vm0, %v2694_v0 }
 0x475   : > { %v2080_v11 = vpop.f32.mrb[8].mxu0 }
 0x476   : > { %v2081_v13 = vpop.f32.mrb[9].mxu0 }
 0x477   : > { %v2082_v14 = vadd.f32 %v2081_v13, %v2080_v11  ;;  %v2083_v15 = vpop.f32.mrb[10].mxu0 }
 0x478   : > { %v2084_v16 = vpop.f32.mrb[11].mxu0 }
 0x479   : > { %v1054_v17 = vadd.f32 %v2082_v14, %v1975_v12  ;;  %v2085_v18 = vadd.f32 %v2084_v16, %v2083_v15  ;;  %v1993_v16 = vld [vmem:[%s3321_s6] ss:$0 sm:$0xff] }
 0x47b   : > { %v1057_v19 = vadd.f32 %v2085_v18, %v1975_v12  ;;  %v1060_v20 = vmax.f32 %v1054_v17, 0.0 }
 0x47d   : > { %v1061_v21 = vmax.f32 %v1057_v19, 0.0 }
 0x47f   : > { %v1062_v22 = vpack.c.bf16 %v1061_v21, %v1060_v20 }
 0x481   : > { %2141 = vmatpush3.bf16.msra.mxu0 %v1062_v22  ;;  %1272 = vmatprep.mubr.bf16.mxu1 %v1062_v22 }
 0x482   : > { %2146 = vmatprep.subr.bf16.mxu0 %v2694_v0 }
 0x484   : > { %2143 = vmatmul.mubr.msk.bf16.vlgmr.msra.gmra.mrb[12].mxu0 %vm617_vm1, %v3120_v4  ;;  %v1309_v4 = vrot.slane %v1283_v27, %v1308_v32 }
 0x485   : > { %2162 = vmatprep.mubr.msk.bf16.mxu0 %vm2695_vm0, %v2694_v0  ;;  %2147 = vmatpush3.bf16.msra.mxu0 %v2348_v49 }
 0x486   : > { %1311 = vbcast.lane.b32.xlu0 %v1309_v4, 256  ;;  %1315 = vbcast.lane.b32.xlu1 %v1309_v4, 264 }
 0x487   : > { %2148 = vmatprep.subr.bf16.mxu0 %v2694_v0 }
 0x489   : > { %2149 = vmatpush3.bf16.msra.mxu0 %v2349_v50 }
 0x48a   : > { %1322 = vbcast.lane.b32.xlu0 %v1320_v34, 256  ;;  %1326 = vbcast.lane.b32.xlu1 %v1320_v34, 264 }
 0x48b   : > { %2150 = vmatprep.subr.bf16.mxu0 %v2694_v0 }
 0x48d   : > { %2151 = vmatpush3.bf16.msra.mxu0 %v2350_v51 }
 0x48e   : > { %1333 = vbcast.lane.b32.xlu0 %v1331_v36, 256  ;;  %1337 = vbcast.lane.b32.xlu1 %v1331_v36, 264 }
 0x48f   : > { %2152 = vmatprep.subr.bf16.mxu0 %v2694_v0 }
 0x491   : > { %2153 = vmatpush3.bf16.msra.mxu0 %v2351_v52 }
 0x492   : > { %1344 = vbcast.lane.b32.xlu0 %v1342_v38, 256  ;;  %1348 = vbcast.lane.b32.xlu1 %v1342_v38, 264 }
 0x493   : > { %2154 = vmatprep.subr.bf16.mxu0 %v2694_v0 }
 0x495   : > { %2155 = vmatpush3.bf16.msra.mxu0 %v2352_v53 }
 0x496   : > { %1355 = vbcast.lane.b32.xlu0 %v1353_v40, 256  ;;  %1359 = vbcast.lane.b32.xlu1 %v1353_v40, 264 }
 0x497   : > { %2156 = vmatprep.subr.bf16.mxu0 %v2694_v0 }
 0x499   : > { %2157 = vmatpush3.bf16.msra.mxu0 %v2353_v54 }
 0x49a   : > { %1366 = vbcast.lane.b32.xlu0 %v1364_v42, 256  ;;  %1370 = vbcast.lane.b32.xlu1 %v1364_v42, 264 }
 0x49b   : > { %2158 = vmatprep.subr.bf16.mxu0 %v2694_v0 }
 0x49d   : > { %2159 = vmatpush3.bf16.msra.mxu0 %v2354_v55 }
 0x49e   : > { %2160 = vmatprep.subr.bf16.mxu0 %v2694_v0 }
 0x4a1   : > { %2161 = vmatpush3.bf16.msra.mxu0 %v2355_v56 }
 0x4b9   : > { %1493 = vmax.xlane.f32.xlu0 %v1492_v43 }
 0x4f8   : > { %v1312_v5 = vpop.permute.xlu0 %1311  ;;  %v1316_v6 = vpop.permute.xlu1 %1315 }
 0x4f9   : > { %vm1376_vm5 = vcmp.gt.f32.partialorder %v1312_v5, 0.0  ;;  %vm1377_vm9 = vcmp.gt.f32.partialorder %v1316_v6, 0.0 }
 0x4fc   : > { %v1323_v7 = vpop.permute.xlu0 %1322  ;;  %v1327_v8 = vpop.permute.xlu1 %1326 }
 0x4fd   : > { %vm1378_vm7 = vcmp.gt.f32.partialorder %v1323_v7, 0.0  ;;  %vm1379_vm10 = vcmp.gt.f32.partialorder %v1327_v8, 0.0 }
 0x500   : > { %v1334_v9 = vpop.permute.xlu0 %1333  ;;  %v1338_v10 = vpop.permute.xlu1 %1337 }
 0x501   : > { %vm1380_vm8 = vcmp.gt.f32.partialorder %v1334_v9, 0.0  ;;  %vm1381_vm12 = vcmp.gt.f32.partialorder %v1338_v10, 0.0 }
 0x504   : > { %v1345_v11 = vpop.permute.xlu0 %1344  ;;  %v1349_v12 = vpop.permute.xlu1 %1348 }
 0x505   : > { %vm1382_vm11 = vcmp.gt.f32.partialorder %v1345_v11, 0.0  ;;  %vm1383_vm15 = vcmp.gt.f32.partialorder %v1349_v12, 0.0 }
 0x508   : > { %v1356_v13 = vpop.permute.xlu0 %1355  ;;  %v1360_v14 = vpop.permute.xlu1 %1359 }
 0x509   : > { %vm1384_vm13 = vcmp.gt.f32.partialorder %v1356_v13, 0.0 }
 0x50c   : > { %v1367_v21 = vpop.permute.xlu0 %1366  ;;  %v1371_v24 = vpop.permute.xlu1 %1370 }
 0x50d   : > { %vm1386_vm14 = vcmp.gt.f32.partialorder %v1367_v21, 0.0  ;;  %vm1387_vm1 = vcmp.gt.f32.partialorder %v1371_v24, 0.0 }
 0x557   : > { %v1097_v44 = vpop.f32.mrb[12].mxu0 }
 0x558   : > { %v2144_v45 = vpop.f32.mrb[13].mxu0 }
 0x559   : > { %v1100_v46 = vpop.f32.mrb[14].mxu0 }
 0x55a   : > { %v1104_v47 = vpack.c.bf16 %v1100_v46, %v1097_v44  ;;  %v2145_v48 = vpop.f32.mrb[15].mxu0 }
 0x55c   : > { %1273 = vmatmul.mubr.bf16.vlgmr.msra.gmra.mrb[4].mxu1 %v1104_v47 }
 0x55d   : > { %2182 = vmatprep.mubr.msk.bf16.mxu1 %vm2695_vm0, %v2694_v0  ;;  %2167 = vmatpush3.bf16.msra.mxu1 %v2356_v57  ;;  %vm1385_vm0 = vcmp.gt.f32.partialorder %v1360_v14, 0.0 }
 0x55e   : > { %2168 = vmatprep.subr.bf16.mxu1 %v2694_v0 }
 0x561   : > { %2169 = vmatpush3.bf16.msra.mxu1 %v2357_v58 }
 0x562   : > { %2170 = vmatprep.subr.bf16.mxu1 %v2694_v0 }
 0x565   : > { %2171 = vmatpush3.bf16.msra.mxu1 %v2358_v59 }
 0x566   : > { %2172 = vmatprep.subr.bf16.mxu1 %v2694_v0 }
 0x569   : > { %2173 = vmatpush3.bf16.msra.mxu1 %v2359_v60 }
 0x56a   : > { %2174 = vmatprep.subr.bf16.mxu1 %v2694_v0 }
 0x56d   : > { %2175 = vmatpush3.bf16.msra.mxu1 %v2360_v61 }
 0x56e   : > { %2176 = vmatprep.subr.bf16.mxu1 %v2694_v0 }
 0x571   : > { %2177 = vmatpush3.bf16.msra.mxu1 %v2361_v62 }
 0x572   : > { %2178 = vmatprep.subr.bf16.mxu1 %v2694_v0 }
 0x62f   : > { %v2104_v15 = vpop.f32.mrb[4].mxu1 }
 0x630   : > { %v2105_v17 = vpop.f32.mrb[5].mxu1 }
 0x631   : > { %v2106_v18 = vadd.f32 %v2105_v17, %v2104_v15  ;;  %v2107_v19 = vpop.f32.mrb[6].mxu1 }
 0x632   : > { %v2108_v20 = vpop.f32.mrb[7].mxu1 }
 0x633   : > { %v1275_v22 = vadd.f32 %v2106_v18, %v1993_v16  ;;  %v2109_v23 = vadd.f32 %v2108_v20, %v2107_v19 }
 0x635   : > { %v1281_v25 = vmax.f32 %v1275_v22, 0.0  ;;  %v1278_v26 = vadd.f32 %v2109_v23, %v1993_v16 }
 0x637   : > { %v1420_v27 = vsel %vm1372_vm2, %v1281_v25, -3.4028235e+38  ;;  %v1422_v28 = vsel %vm1374_vm4, %v1281_v25, -3.4028235e+38  ;;  %v1282_v29 = vmax.f32 %v1278_v26, 0.0  ;;  %vm1506_vm2 = vcmask 1041409  }
 0x638   : > { %v1424_v30 = vsel %vm1376_vm5, %v1281_v25, -3.4028235e+38  ;;  %v1426_v31 = vsel %vm1378_vm7, %v1281_v25, -3.4028235e+38  ;;  %v1428_v32 = vsel %vm1380_vm8, %v1281_v25, -3.4028235e+38 }
 0x639   : > { %v1421_v4 = vsel %vm1373_vm3, %v1282_v29, -3.4028235e+38  ;;  %v1423_v33 = vsel %vm1375_vm6, %v1282_v29, -3.4028235e+38  ;;  %v1425_v34 = vsel %vm1377_vm9, %v1282_v29, -3.4028235e+38 }
 0x63a   : > { %v1427_v35 = vsel %vm1379_vm10, %v1282_v29, -3.4028235e+38  ;;  %v1429_v36 = vsel %vm1381_vm12, %v1282_v29, -3.4028235e+38  ;;  %v1430_v37 = vsel %vm1382_vm11, %v1281_v25, -3.4028235e+38  ;;  %v1436_v38 = vmax.f32 %v1420_v27, %v1421_v4  ;;  %v1494_v4 = vpop.xlane.xlu0 %1493 }
 0x63b   : > { %v1431_v39 = vsel %vm1383_vm15, %v1282_v29, -3.4028235e+38  ;;  %v1432_v40 = vsel %vm1384_vm13, %v1281_v25, -3.4028235e+38  ;;  %v1433_v41 = vsel %vm1385_vm0, %v1282_v29, -3.4028235e+38  ;;  %v1443_v42 = vmax.f32 %v1422_v28, %v1423_v33 }
 0x63c   : > { %v1437_v43 = vrot.slane %v1436_v38, 4  ;;  %v1450_v44 = vmax.f32 %v1424_v30, %v1425_v34  ;;  %v1457_v45 = vmax.f32 %v1426_v31, %v1427_v35  ;;  %v1464_v46 = vmax.f32 %v1428_v32, %v1429_v36 }
 0x63d   : > { %v1444_v47 = vrot.slane %v1443_v42, 4  ;;  %v1471_v48 = vmax.f32 %v1430_v37, %v1431_v39  ;;  %v1478_v49 = vmax.f32 %v1432_v40, %v1433_v41  ;;  %v1434_v50 = vsel %vm1386_vm14, %v1281_v25, -3.4028235e+38 }
 0x63e   : > { %v1438_v51 = vmax.f32 %v1436_v38, %v1437_v43  ;;  %v1451_v52 = vrot.slane %v1450_v44, 4  ;;  %v1458_v53 = vrot.slane %v1457_v45, 4  ;;  %v1465_v54 = vrot.slane %v1464_v46, 4 }
 0x63f   : > { %v1445_v55 = vmax.f32 %v1443_v42, %v1444_v47  ;;  %v1472_v56 = vrot.slane %v1471_v48, 4  ;;  %v1479_v57 = vrot.slane %v1478_v49, 4  ;;  %v1435_v58 = vsel %vm1387_vm1, %v1282_v29, -3.4028235e+38  ;;  %v2010_v47 = vld [vmem:[%s3322_s24] ss:$0 sm:$0xff] }
 0x640   : > { %v1439_v59 = vrot.slane %v1438_v51, 2  ;;  %v1452_v60 = vmax.f32 %v1450_v44, %v1451_v52  ;;  %v1459_v61 = vmax.f32 %v1457_v45, %v1458_v53  ;;  %v1466_v62 = vmax.f32 %v1464_v46, %v1465_v54  ;;  %v2362_v45 = vld [vmem:[#allocation14 + $0x30] sm:$0xff]   ;;  %v2363_v46 = vld [vmem:[#allocation14 + $0x38] sm:$0xff]  }
 0x641   : > { %v1446_v63 = vrot.slane %v1445_v55, 2  ;;  %v1473_v1 = vmax.f32 %v1471_v48, %v1472_v56  ;;  %v1480_v2 = vmax.f32 %v1478_v49, %v1479_v57  ;;  %v1485_v3 = vmax.f32 %v1434_v50, %v1435_v58  ;;  %2179 = vmatpush3.bf16.msra.mxu1 %v2362_v45 }
 0x642   : > { %v1440_v5 = vmax.f32 %v1438_v51, %v1439_v59  ;;  %v1453_v6 = vrot.slane %v1452_v60, 2  ;;  %v1460_v7 = vrot.slane %v1459_v61, 2  ;;  %v1467_v8 = vrot.slane %v1466_v62, 2  ;;  %2180 = vmatprep.subr.bf16.mxu1 %v2694_v0 }
 0x643   : > { %v1447_v9 = vmax.f32 %v1445_v55, %v1446_v63  ;;  %v1474_v10 = vrot.slane %v1473_v1, 2  ;;  %v1481_v11 = vrot.slane %v1480_v2, 2  ;;  %v1486_v12 = vrot.slane %v1485_v3, 4  ;;  %v2022_v55 = vld [vmem:[%s3323_s13] ss:$0 sm:$0xff] }
 0x644   : > { %v1441_v13 = vrot.slane %v1440_v5, 1  ;;  %v1454_v14 = vmax.f32 %v1452_v60, %v1453_v6  ;;  %v1461_v15 = vmax.f32 %v1459_v61, %v1460_v7  ;;  %v1468_v16 = vmax.f32 %v1466_v62, %v1467_v8 }
 0x645   : > { %v1448_v17 = vrot.slane %v1447_v9, 1  ;;  %v1475_v18 = vmax.f32 %v1473_v1, %v1474_v10  ;;  %v1482_v19 = vmax.f32 %v1480_v2, %v1481_v11  ;;  %v1487_v20 = vmax.f32 %v1485_v3, %v1486_v12  ;;  %2181 = vmatpush3.bf16.msra.mxu1 %v2363_v46 }
 0x646   : > { %v1442_v21 = vmax.f32 %v1440_v5, %v1441_v13  ;;  %v1455_v22 = vrot.slane %v1454_v14, 1  ;;  %v1462_v23 = vrot.slane %v1461_v15, 1  ;;  %v1469_v24 = vrot.slane %v1468_v16, 1 }
 0x647   : > { %vm1508_vm3 = vcmask 1042434   ;;  %v1449_v25 = vmax.f32 %v1447_v9, %v1448_v17  ;;  %v1476_v26 = vrot.slane %v1475_v18, 1  ;;  %v1488_v27 = vrot.slane %v1487_v20, 2 }
 0x648   : > { %vm1510_vm4 = vcmask 1043459   ;;  %v1456_v28 = vmax.f32 %v1454_v14, %v1455_v22  ;;  %v1483_v29 = vrot.slane %v1482_v19, 1  ;;  %vm1512_vm5 = vcmask 1044484  }
 0x649   : > { %v1463_v30 = vmax.f32 %v1461_v15, %v1462_v23  ;;  %v1507_v31 = vsel %vm1506_vm2, %v1449_v25, %v1442_v21  ;;  %v1489_v32 = vmax.f32 %v1487_v20, %v1488_v27  ;;  %vm1514_vm6 = vcmask 1045509  }
 0x64a   : > { %v1470_v33 = vmax.f32 %v1468_v16, %v1469_v24  ;;  %v1509_v34 = vsel %vm1508_vm3, %v1456_v28, %v1507_v31  ;;  %vm1516_vm7 = vcmask 1046534   ;;  %v1477_v35 = vmax.f32 %v1475_v18, %v1476_v26 }
 0x64b   : > { %v1511_v36 = vsel %vm1510_vm4, %v1463_v30, %v1509_v34  ;;  %v1490_v37 = vrot.slane %v1489_v32, 1  ;;  %v1484_v38 = vmax.f32 %v1482_v19, %v1483_v29  ;;  %vm1495_vm8 = vcmp.gt.f32.partialorder %v1494_v4, 0.0 }
 0x64c   : > { %v1513_v39 = vsel %vm1512_vm5, %v1470_v33, %v1511_v36  ;;  %vm1518_vm9 = vcmask 1047559   ;;  %vm2019_vm10 = vmpackc.low %vm1495_vm8, %vm1495_vm8 }
 0x64d   : > { %v1515_v40 = vsel %vm1514_vm6, %v1477_v35, %v1513_v39  ;;  %v1491_v41 = vmax.f32 %v1489_v32, %v1490_v37 }
 0x64e   : > { %v1517_v42 = vsel %vm1516_vm7, %v1484_v38, %v1515_v40 }
 0x64f   : > { %v1519_v43 = vsel %vm1518_vm9, %v1491_v41, %v1517_v42 }
 0x650   : > { %v2020_v44 = vpack.c.bf16 %v1519_v43, %v1519_v43 }
 0x652   : > { %2163 = vmatmul.mubr.msk.bf16.vlgmr.msra.gmra.mrb[16].mxu0 %vm2019_vm10, %v2020_v44 }
 0x725   : > { %v1628_v48 = vpop.f32.mrb[16].mxu0 }
 0x726   : > { %v1629_v49 = vadd.f32 %v2010_v47, %v1628_v48  ;;  %v2164_v50 = vpop.f32.mrb[17].mxu0 }
 0x727   : > { %v1631_v51 = vpop.f32.mrb[18].mxu0 }
 0x728   : > { %v1634_v52 = vmax.f32 %v1629_v49, 0.0  ;;  %v2165_v53 = vpop.f32.mrb[19].mxu0 }
 0x72a   : > { %v1635_v54 = vpack.c.bf16 %v1634_v52, %v1634_v52 }
 0x72c   : > { %2183 = vmatmul.mubr.bf16.vlgmr.msra.gmra.mrb[8].mxu1 %v1635_v54 }
 0x7ff   : > { %v1741_v0 = vpop.f32.mrb[8].mxu1 }
 0x800   : > { %v1742_v56 = vadd.f32 %v2022_v55, %v1741_v0  ;;  %v2184_v57 = vpop.f32.mrb[9].mxu1 }
 0x801   : > { %v1744_v58 = vpop.f32.mrb[10].mxu1 }
 0x802   : > { %v2031_v59 = vmul.f32 -1.442695, %v1742_v56  ;;  %v2185_v60 = vpop.f32.mrb[11].mxu1 }
 0x804   : > { %2364 = vpow2.f32 %v2031_v59 }
 0x80e   : > { %v2365_v61 = vpop.eup %2364 }
 0x80f   : > { %v1750_v62 = vadd.f32 1.0, %v2365_v61 }
 0x811   : > { %2366 = vrcp.f32 %v1750_v62 }
 0x81b   : > { %v2367_v63 = vpop.eup %2366 }
 0x81c   : > { %1753 = vst [vmem:[%s605_s16] sm:$0xff] %v2367_v63 }
 0x81d   : > { %2611 = shalt.err (!%p2608_p6)
}
 0x81e   : > { %s2612_s22 = scalar_lea.hbm %s3194_s21, 128  ;;  %s2616_s6 = scalar_lea.hbm %s3325_s17, 512 }
 0x81f   : > { %p2613_p4 = scmp.ne.s32.totalorder %s3194_s21, %s2612_s22  ;;  %p2617_p7 = scmp.lt.u32.totalorder %s3194_s21, %s3325_s17 }
 0x820   : > { %p2618_p8 = scmp.lt.u32.totalorder %s2616_s6, %s2612_s22  ;;  %p2620_p2 = scmp.lt.u32.totalorder %s2612_s22, %s3194_s21 }
 0x821   : > { %p2614_p13 = pnand %p2613_p4, %p3326_p3 }
 0x822   : > { %p2619_p12 = por %p2618_p8, %p2617_p7 }
 0x823   : > { %p2615_p5 = pneg %p2614_p13 }
 0x824   : > { %p2621_p9 = por %p2620_p2, %p2619_p12 }
 0x826   : > { %p2622_p0 = pnand %p2621_p9, %p2615_p5 }
 0x828   : > { %2625 = shalt.err (!%p2622_p0)
}
 0x829   : > { %2212 = dma.vmem_to_hbm [thread:$0]  (%p3326_p3), %s3196_s10, 128, %s3194_s21, %s1755_s12  }
 0x82a PF: > { %s3327_s24 = sld [smem:[#allocation23_spill]]  ;;  %s3328_s3 = sld [smem:[#allocation28_spill]] }
 0x82b   : > { %p2255_p10 = scmp.ge.s32.totalorder %s2680_s28, 2 }
 0x830   : > { %s1780_s20 = sand.u32 1, %s3327_s24   ;;  %p3329_p11 = scmp.ne.s32.totalorder %s3328_s3, 0 }
 0x831   : > { %s1781_s13 = scalar_lea.sflag [#allocation4], %s1780_s20 }
 0x832   : > { %p2241_p1 = pnand %p2255_p10, %p3329_p11 }
 0x834   : > { %2663 = dma.done.wait (!%p2241_p1), %s1781_s13, 128  }
 0x835   : > { %2665 = vsyncadd (!%p2241_p1), %s1781_s13, 4294967168  ;;  %s3330_s28 = sld [smem:[#allocation25_spill]]  ;;  %s3331_s27 = sld [smem:[#allocation24_spill]] }
 0x836   : > { %s3332_s16 = sld [smem:[#allocation27_spill]]  ;;  %s3333_s25 = smov %s2672_s26 }
 0x83b   : > { %p32_p6 = scmp.ge.s32.totalorder %s3330_s28, 6   ;;  %s3334_s26 = smov %s3331_s27 }
 0x83c   : > { %s3335_s27 = smov %s3332_s16 }
 0x83d   :  { %34 = sbr.rel (!%p32_p6) target bundleno = 19 (0x13), region = 161 }
 0x844   :  { %1786 = vsyncpa [#allocation3], 1 }
 0x845   :  { %1788 = vsyncpa [#allocation3 + $0x1], 1 }
 0x846   :  { %1789 = vsyncpa [#allocation6], 1 }
 0x847   :  { %1791 = vsyncpa [#allocation6 + $0x1], 1 }
 0x848   :  { %1792 = vsyncpa [#allocation9], 1 }
 0x849   :  { %1793 = vsyncpa [#allocation12], 1 }
 0x84a   :  { %1794 = vsyncpa [#allocation15], 1 }
 0x84b   :  { %1795 = vsyncpa [#allocation4], 1 }
 0x84c   :  { %1797 = vsyncpa [#allocation4 + $0x1], 1 }

</bundles_post_ra>
